<compile_context>
chip_gen: v7x
topology: tpu7x:2x2x1
jax: 0.10.0
libtpu: 0.0.40
codegen_flags: <defaults>
</compile_context>

<pallas_src>
import math

import numpy as np
import jax
import jax.numpy as jnp
from jax import lax
from jax.experimental import pallas as pl
from jax.experimental.pallas import tpu as pltpu


# --------------------------------------------------------------------------
# Static interpolation tables (host side, PyTorch F.interpolate semantics).
# --------------------------------------------------------------------------
def _linear_table(P, R):
    """mode='trilinear', align_corners=False (per-axis linear)."""
    i0 = np.empty((R,), np.int32)
    i1 = np.empty((R,), np.int32)
    fr = np.empty((R,), np.float32)
    scale = P / R
    for o in range(R):
        src = max(scale * (o + 0.5) - 0.5, 0.0)
        a = min(int(math.floor(src)), P - 1)
        b = min(a + 1, P - 1)
        i0[o], i1[o], fr[o] = a, b, src - a
    return i0, i1, fr


def _nearest_table(P, R):
    """mode='nearest'."""
    scale = P / R
    return np.array([min(int(math.floor(o * scale)), P - 1) for o in range(R)],
                    np.int32)


# --------------------------------------------------------------------------
# Per-sample crop+resize matrices, built once in plain JAX (crop offsets folded
# into the source indices so the kernel needs no dynamic indexing at all).
# --------------------------------------------------------------------------
def _linear_matrix_batch(offsets, full, P, R, *, as_rhs):
    """as_rhs=True  -> (N, full, R): x(rows, full) @ M -> (rows, R)
       as_rhs=False -> (N, R, full): M @ x(full, cols) -> (R, cols)"""
    i0, i1, fr = _linear_table(P, R)
    i0 = jnp.asarray(i0)
    i1 = jnp.asarray(i1)
    fr = jnp.asarray(fr)
    offsets = offsets.astype(jnp.int32)
    c0 = offsets[:, None] + i0[None, :]                       # (N, R)
    c1 = offsets[:, None] + i1[None, :]
    src = jnp.arange(full, dtype=jnp.int32)
    if as_rhs:
        eq0 = src[None, :, None] == c0[:, None, :]            # (N, full, R)
        eq1 = src[None, :, None] == c1[:, None, :]
        w = (jnp.where(eq0, (1.0 - fr)[None, None, :], 0.0)
             + jnp.where(eq1, fr[None, None, :], 0.0))
    else:
        eq0 = src[None, None, :] == c0[:, :, None]            # (N, R, full)
        eq1 = src[None, None, :] == c1[:, :, None]
        w = (jnp.where(eq0, (1.0 - fr)[None, :, None], 0.0)
             + jnp.where(eq1, fr[None, :, None], 0.0))
    return w.astype(jnp.float32)


def _nearest_matrix_batch(offsets, full, P, R, *, as_rhs):
    idx = jnp.asarray(_nearest_table(P, R))
    offsets = offsets.astype(jnp.int32)
    c = offsets[:, None] + idx[None, :]                       # (N, R)
    src = jnp.arange(full, dtype=jnp.int32)
    if as_rhs:
        w = src[None, :, None] == c[:, None, :]               # (N, full, R)
    else:
        w = src[None, None, :] == c[:, :, None]               # (N, R, full)
    return w.astype(jnp.float32)


# --------------------------------------------------------------------------
# Pallas kernel (one sample per grid step; channels folded into the matmuls).
# --------------------------------------------------------------------------
def _make_kernel(C, D, H, W, img_dtype, msk_dtype):
    DH = D * H
    img_dt = np.dtype(img_dtype)
    msk_dt = np.dtype(msk_dtype)

    def kernel(x_ref, m_ref, kimg_ref, wimg_ref, kmsk_ref, wmsk_ref,
               im_ref, ms_ref):
        # x_ref/m_ref: (C, D, H, W).  kimg/kmsk: (RD*RH, D*H) per-sample fused
        # crop+depth+height matrices; wimg/wmsk: (W, RW) with x-offset folded.
        # Outputs: (C, RD*RH, RW).

        # ---- image path (trilinear) ------------------------------------
        xflat = x_ref[...].reshape(C * DH, W)
        if xflat.dtype != img_dt:
            xflat = xflat.astype(img_dt)
        t_img = jnp.dot(xflat, wimg_ref[...],
                        preferred_element_type=jnp.float32)      # (C*DH, RW)
        kimg = kimg_ref[...]                                      # (RDRH, DH)
        for c in range(C):
            blk = t_img[c * DH:(c + 1) * DH]
            if blk.dtype != img_dt:
                blk = blk.astype(img_dt)
            im_ref[c] = jnp.dot(kimg, blk,
                                preferred_element_type=jnp.float32
                                ).astype(im_ref.dtype)

        # ---- mask path (nearest, narrow dtype) --------------------------
        mflat = m_ref[...].reshape(C * DH, W)
        if mflat.dtype != msk_dt:
            mflat = mflat.astype(msk_dt)
        t_msk = jnp.dot(mflat, wmsk_ref[...],
                        preferred_element_type=jnp.float32)      # (C*DH, RW)
        kmsk = kmsk_ref[...]
        for c in range(C):
            blk = t_msk[c * DH:(c + 1) * DH]
            if blk.dtype != msk_dt:
                blk = blk.astype(msk_dt)
            ms_ref[c] = jnp.dot(kmsk, blk,
                                preferred_element_type=jnp.float32
                                ).astype(ms_ref.dtype)

    return kernel


# --------------------------------------------------------------------------
# Per-generation VMEM limit (review: do not hardcode 64 MiB on v7x).
# --------------------------------------------------------------------------
def _derive_vmem_limit_bytes():
    cap = None
    try:
        cap = getattr(pltpu.get_tpu_info(), "vmem_capacity_bytes", None)
    except Exception:
        cap = None
    if not cap:
        cap = 64 * 1024 * 1024          # conservative (v7x-sized) fallback
    # Leave ~25% headroom for outputs / compiler-internal scratch:
    # 96 MiB on v5e/v6e (128 MiB physical), 48 MiB on v7x (64 MiB physical).
    return int(cap - cap // 4)


# --------------------------------------------------------------------------
# Crop-offset generation (mirrors _get_crop_params / _get_crop_params_test).
# --------------------------------------------------------------------------
def _get_crop_params(key, N, D, H, W, pd, ph, pw, rand_z, max_offset, training):
    z_center = jnp.full((N,), (D - pd) // 2, jnp.int32)
    y_center = jnp.full((N,), (H - ph) // 2, jnp.int32)
    x_center = jnp.full((N,), (W - pw) // 2, jnp.int32)
    if not training:
        return z_center, y_center, x_center
    kz, ky, kx, ko = jax.random.split(key, 4)
    if max_offset is None:
        z1 = jax.random.randint(kz, (N,), 0, D - pd + 1, jnp.int32)
        y1 = jax.random.randint(ky, (N,), 0, H - ph + 1, jnp.int32)
        x1 = jax.random.randint(kx, (N,), 0, W - pw + 1, jnp.int32)
    else:
        off = jax.random.randint(ko, (3, N), -max_offset, max_offset + 1, jnp.int32)
        z1 = jax.random.randint(kz, (N,), 0, D - pd + 1, jnp.int32)
        # TODO(synk): the PyTorch module does not clamp and can slice out of
        # range; we clamp to keep the crop window valid (documented divergence).
        y1 = jnp.clip((H - ph) // 2 + off[1], 0, H - ph)
        x1 = jnp.clip((W - pw) // 2 + off[2], 0, W - pw)
    if not rand_z:
        z1 = z_center
    return z1, y1, x1


# --------------------------------------------------------------------------
# Affine update (kept in plain JAX: N tiny 4x4 matmuls).
# --------------------------------------------------------------------------
def _update_affine(affine, x1s, y1s, z1s, crop, resize, do_resize):
    dt = affine.dtype
    N = affine.shape[0]
    T = jnp.broadcast_to(jnp.eye(4, dtype=dt), (N, 4, 4))
    T = T.at[:, 0, 3].set(x1s.astype(dt))
    T = T.at[:, 1, 3].set(y1s.astype(dt))
    T = T.at[:, 2, 3].set(z1s.astype(dt))
    out = jnp.matmul(affine, T)
    if do_resize:
        pd, ph, pw = crop
        rd, rh, rw = resize
        S = jnp.diag(jnp.array([pw / rw, ph / rh, pd / rd, 1.0], dtype=dt))
        out = jnp.matmul(out, S)
    return out


# --------------------------------------------------------------------------
# Forward wrapper (mirrors RandomCropResizeWithAffine.forward).
# --------------------------------------------------------------------------
def random_crop_resize_with_affine(x, m, affine, crop_shape, resize_shape, *,
                                   rand_z=False, max_offset=None,
                                   training=True, key=None,
                                   matmul_dtype=jnp.float32,
                                   mask_dtype=jnp.bfloat16):
    ori_dim = x.ndim
    if ori_dim == 4:
        x = x[:, None]
        m = m[:, None]
    N, C, D, H, W = x.shape

    # Early-out mirrors the PyTorch module exactly: compares against the RAW
    # crop_shape (may contain -1) and also skips resizing.
    if (D, H, W) == tuple(crop_shape):
        xs = x[:, 0] if C == 1 else x
        ms = m[:, 0] if C == 1 else m
        return xs, ms, affine

    pd, ph, pw = tuple(c if c != -1 else s for c, s in zip(crop_shape, (D, H, W)))
    rd, rh, rw = tuple(r if r != -1 else s for r, s in zip(resize_shape, (D, H, W)))
    do_resize = (rd, rh, rw) != (pd, ph, pw)

    if key is None:
        key = jax.random.PRNGKey(0)
    z1s, y1s, x1s = _get_crop_params(key, N, D, H, W, pd, ph, pw,
                                     rand_z, max_offset, training)

    # Per-sample interpolation matrices (crop offsets folded in), built once
    # in plain JAX directly in the kernel matmul dtypes (no in-kernel casts).
    md = _linear_matrix_batch(z1s, D, pd, rd, as_rhs=False)    # (N, rd, D)
    mh = _linear_matrix_batch(y1s, H, ph, rh, as_rhs=False)    # (N, rh, H)
    mw = _linear_matrix_batch(x1s, W, pw, rw, as_rhs=True)     # (N, W, rw)
    nd = _nearest_matrix_batch(z1s, D, pd, rd, as_rhs=False)
    nh = _nearest_matrix_batch(y1s, H, ph, rh, as_rhs=False)
    nw = _nearest_matrix_batch(x1s, W, pw, rw, as_rhs=True)

    # Fused crop + depth x height resampling matrix: K = kron(Md, Mh) per sample.
    k_img = jnp.einsum('nad,nbh->nabdh', md, mh).reshape(N, rd * rh, D * H)
    k_msk = jnp.einsum('nad,nbh->nabdh', nd, nh).reshape(N, rd * rh, D * H)
    k_img = k_img.astype(matmul_dtype)
    mw = mw.astype(matmul_dtype)
    k_msk = k_msk.astype(mask_dtype)   # one-hot: exact in bf16
    nw = nw.astype(mask_dtype)

    # Stream the mask in a narrow dtype (halves mask HBM traffic; exact for
    # 0/1 and small-integer labels).
    m_in = m if m.dtype == np.dtype(mask_dtype) else m.astype(mask_dtype)

    kernel = _make_kernel(C, D, H, W, matmul_dtype, mask_dtype)
    rdrh, dh = rd * rh, D * H

    grid_spec = pltpu.PrefetchScalarGridSpec(
        num_scalar_prefetch=0,
        grid=(N,),
        in_specs=[
            pl.BlockSpec((None, C, D, H, W), lambda n: (n, 0, 0, 0, 0)),   # x
            pl.BlockSpec((None, C, D, H, W), lambda n: (n, 0, 0, 0, 0)),   # m
            pl.BlockSpec((None, rdrh, dh), lambda n: (n, 0, 0)),           # K_img
            pl.BlockSpec((None, W, rw), lambda n: (n, 0, 0)),              # Mw_img
            pl.BlockSpec((None, rdrh, dh), lambda n: (n, 0, 0)),           # K_msk
            pl.BlockSpec((None, W, rw), lambda n: (n, 0, 0)),              # Mw_msk
        ],
        out_specs=(
            pl.BlockSpec((None, C, rdrh, rw), lambda n: (n, 0, 0, 0)),
            pl.BlockSpec((None, C, rdrh, rw), lambda n: (n, 0, 0, 0)),
        ),
    )

    im_out, ms_out = pl.pallas_call(
        kernel,
        out_shape=(
            jax.ShapeDtypeStruct((N, C, rdrh, rw), x.dtype),
            # NOTE: mask output dtype follows x (matches `x.new_zeros`).
            jax.ShapeDtypeStruct((N, C, rdrh, rw), x.dtype),
        ),
        grid_spec=grid_spec,
        compiler_params=pltpu.CompilerParams(
            dimension_semantics=("parallel",),
            vmem_limit_bytes=_derive_vmem_limit_bytes()),
    )(x, m_in, k_img, mw, k_msk, nw)

    # Kernel writes (RD*RH, RW) slabs; reshape (contiguous) to the 5-D shape.
    im_out = im_out.reshape(N, C, rd, rh, rw)
    ms_out = ms_out.reshape(N, C, rd, rh, rw)

    aff_out = _update_affine(affine, x1s, y1s, z1s,
                             (pd, ph, pw), (rd, rh, rw), do_resize)

    if ori_dim == 4:
        im_out = im_out[:, 0]
        ms_out = ms_out[:, 0]
    return im_out, ms_out, aff_out


# --------------------------------------------------------------------------
# Independent pure-JAX reference for a correctness cross-check.
# --------------------------------------------------------------------------
def _dense_lin(P, R):
    i0, i1, fr = _linear_table(P, R)
    M = np.zeros((R, P), np.float32)
    for o in range(R):
        M[o, i0[o]] += 1.0 - fr[o]
        M[o, i1[o]] += fr[o]
    return jnp.asarray(M)


def _dense_nn(P, R):
    idx = _nearest_table(P, R)
    M = np.zeros((R, P), np.float32)
    for o in range(R):
        M[o, idx[o]] = 1.0
    return jnp.asarray(M)


def reference_forward(x, m, affine, z1s, y1s, x1s, crop, resize):
    N, C, D, H, W = x.shape
    pd, ph, pw = crop
    rd, rh, rw = resize
    do_resize = tuple(crop) != tuple(resize)
    Md, Mh, Mw = _dense_lin(pd, rd), _dense_lin(ph, rh), _dense_lin(pw, rw)
    Nd, Nh, Nw = _dense_nn(pd, rd), _dense_nn(ph, rh), _dense_nn(pw, rw)

    def per_sample(xi, mi, z1, y1, x1):
        zero = jnp.int32(0)
        xc = lax.dynamic_slice(xi, (zero, z1, y1, x1), (C, pd, ph, pw))
        mc = lax.dynamic_slice(mi, (zero, z1, y1, x1), (C, pd, ph, pw))
        xr = jnp.einsum('cdhw,Dd,Hh,Ww->cDHW', xc, Md, Mh, Mw)
        mr = jnp.einsum('cdhw,Dd,Hh,Ww->cDHW', mc, Nd, Nh, Nw)
        return xr, mr

    xr, mr = jax.vmap(per_sample)(x, m, z1s, y1s, x1s)
    aff = _update_affine(affine, x1s, y1s, z1s, crop, resize, do_resize)
    return xr, mr, aff


# --------------------------------------------------------------------------
if __name__ == "__main__":
    key = jax.random.PRNGKey(0)
    kx, km, ka, kc = jax.random.split(key, 4)

    N, C, D, H, W = 2, 2, 8, 16, 16
    crop_shape = (6, 12, 12)
    resize_shape = (8, 16, 16)

    x = jax.random.normal(kx, (N, C, D, H, W), jnp.float32)
    m = (jax.random.uniform(km, (N, C, D, H, W)) > 0.5).astype(jnp.float32)
    affine = (jnp.broadcast_to(jnp.eye(4, dtype=jnp.float32), (N, 4, 4))
              + 0.01 * jax.random.normal(ka, (N, 4, 4), jnp.float32))

    im, ms, aff = random_crop_resize_with_affine(
        x, m, affine, crop_shape, resize_shape,
        rand_z=True, max_offset=None, training=True, key=kc)
    jax.block_until_ready((im, ms, aff))

    # Cross-check against the pure-JAX reference using identical crop offsets.
    z1s, y1s, x1s = _get_crop_params(kc, N, D, H, W, *crop_shape,
                                     rand_z=True, max_offset=None, training=True)
    im_r, ms_r, aff_r = reference_forward(x, m, affine, z1s, y1s, x1s,
                                          crop_shape, resize_shape)

    np.testing.assert_allclose(np.asarray(im), np.asarray(im_r),
                               atol=1e-4, rtol=1e-4)
    np.testing.assert_allclose(np.asarray(ms), np.asarray(ms_r),
                               atol=1e-5, rtol=1e-5)
    np.testing.assert_allclose(np.asarray(aff), np.asarray(aff_r),
                               atol=1e-5, rtol=1e-5)

    print("KERNEL_OK")
</pallas_src>

<mosaic_0001>
module attributes {stable_mosaic.version = 11 : i64} {
  func.func @kernel(%arg0: i32, %arg1: memref<1x2x8x16x16xf32, #tpu.memory_space<vmem>>, %arg2: memref<1x2x8x16x16xbf16, #tpu.memory_space<vmem>>, %arg3: memref<1x128x128xf32, #tpu.memory_space<vmem>>, %arg4: memref<1x16x16xf32, #tpu.memory_space<vmem>>, %arg5: memref<1x128x128xbf16, #tpu.memory_space<vmem>>, %arg6: memref<1x16x16xbf16, #tpu.memory_space<vmem>>, %arg7: memref<1x2x128x16xf32, #tpu.memory_space<vmem>>, %arg8: memref<1x2x128x16xf32, #tpu.memory_space<vmem>>) attributes {dimension_semantics = [#tpu.dimension_semantics<parallel>], iteration_bounds = array<i64: 2>, scalar_prefetch = 0 : i64, scratch_operands = 0 : i64, tpu.core_type = #tpu.core_type<tc>, window_params = [{transform_indices = @transform_0, window_bounds = array<i64: 1, 2, 8, 16, 16>}, {transform_indices = @transform_1, window_bounds = array<i64: 1, 2, 8, 16, 16>}, {transform_indices = @transform_2, window_bounds = array<i64: 1, 128, 128>}, {transform_indices = @transform_3, window_bounds = array<i64: 1, 16, 16>}, {transform_indices = @transform_4, window_bounds = array<i64: 1, 128, 128>}, {transform_indices = @transform_5, window_bounds = array<i64: 1, 16, 16>}, {transform_indices = @transform_6, window_bounds = array<i64: 1, 2, 128, 16>}, {transform_indices = @transform_7, window_bounds = array<i64: 1, 2, 128, 16>}]} {
    %c0 = arith.constant 0 : index
    %c0_0 = arith.constant 0 : index
    %c0_1 = arith.constant 0 : index
    %c0_2 = arith.constant 0 : index
    %c0_3 = arith.constant 0 : index
    %0 = vector.load %arg1[%c0, %c0_0, %c0_1, %c0_2, %c0_3] : memref<1x2x8x16x16xf32, #tpu.memory_space<vmem>>, vector<1x2x8x16x16xf32>
    %1 = vector.shape_cast %0 : vector<1x2x8x16x16xf32> to vector<2x8x16x16xf32>
    %2 = vector.shape_cast %1 : vector<2x8x16x16xf32> to vector<256x16xf32>
    %c0_4 = arith.constant 0 : index
    %c0_5 = arith.constant 0 : index
    %c0_6 = arith.constant 0 : index
    %3 = vector.load %arg4[%c0_4, %c0_5, %c0_6] : memref<1x16x16xf32, #tpu.memory_space<vmem>>, vector<1x16x16xf32>
    %4 = vector.shape_cast %3 : vector<1x16x16xf32> to vector<16x16xf32>
    %cst = arith.constant dense<0.000000e+00> : vector<256x16xf32>
    %5 = tpu.matmul %2, %4, %cst {dimension_numbers = #tpu.dot_dimension_numbers<[1], [0], [0], [1], [0, 0, 1, 1], [], []>} : vector<256x16xf32>, vector<16x16xf32>, vector<256x16xf32> -> vector<256x16xf32>
    %c0_7 = arith.constant 0 : index
    %c0_8 = arith.constant 0 : index
    %c0_9 = arith.constant 0 : index
    %6 = vector.load %arg3[%c0_7, %c0_8, %c0_9] : memref<1x128x128xf32, #tpu.memory_space<vmem>>, vector<1x128x128xf32>
    %7 = vector.shape_cast %6 : vector<1x128x128xf32> to vector<128x128xf32>
    %8 = vector.extract_strided_slice %5 {offsets = [0, 0], sizes = [128, 16], strides = [1, 1]} : vector<256x16xf32> to vector<128x16xf32>
    %cst_10 = arith.constant dense<0.000000e+00> : vector<128x16xf32>
    %9 = tpu.matmul %7, %8, %cst_10 {dimension_numbers = #tpu.dot_dimension_numbers<[1], [0], [0], [1], [0, 0, 1, 1], [], []>} : vector<128x128xf32>, vector<128x16xf32>, vector<128x16xf32> -> vector<128x16xf32>
    %c0_11 = arith.constant 0 : index
    %c0_12 = arith.constant 0 : index
    %c0_13 = arith.constant 0 : index
    %c0_14 = arith.constant 0 : index
    %10 = vector.load %arg7[%c0_11, %c0_12, %c0_13, %c0_14] : memref<1x2x128x16xf32, #tpu.memory_space<vmem>>, vector<1x1x128x16xf32>
    %11 = vector.shape_cast %10 : vector<1x1x128x16xf32> to vector<128x16xf32>
    %12 = vector.shape_cast %9 : vector<128x16xf32> to vector<1x1x128x16xf32>
    tpu.vector_store %arg7[%c0_11, %c0_12, %c0_13, %c0_14], %12 {strides = array<i32>} : memref<1x2x128x16xf32, #tpu.memory_space<vmem>>, vector<1x1x128x16xf32>,
    %13 = vector.extract_strided_slice %5 {offsets = [128, 0], sizes = [128, 16], strides = [1, 1]} : vector<256x16xf32> to vector<128x16xf32>
    %cst_15 = arith.constant dense<0.000000e+00> : vector<128x16xf32>
    %14 = tpu.matmul %7, %13, %cst_15 {dimension_numbers = #tpu.dot_dimension_numbers<[1], [0], [0], [1], [0, 0, 1, 1], [], []>} : vector<128x128xf32>, vector<128x16xf32>, vector<128x16xf32> -> vector<128x16xf32>
    %c0_16 = arith.constant 0 : index
    %c1 = arith.constant 1 : index
    %c0_17 = arith.constant 0 : index
    %c0_18 = arith.constant 0 : index
    %15 = vector.load %arg7[%c0_16, %c1, %c0_17, %c0_18] : memref<1x2x128x16xf32, #tpu.memory_space<vmem>>, vector<1x1x128x16xf32>
    %16 = vector.shape_cast %15 : vector<1x1x128x16xf32> to vector<128x16xf32>
    %17 = vector.shape_cast %14 : vector<128x16xf32> to vector<1x1x128x16xf32>
    tpu.vector_store %arg7[%c0_16, %c1, %c0_17, %c0_18], %17 {strides = array<i32>} : memref<1x2x128x16xf32, #tpu.memory_space<vmem>>, vector<1x1x128x16xf32>,
    %c0_19 = arith.constant 0 : index
    %c0_20 = arith.constant 0 : index
    %c0_21 = arith.constant 0 : index
    %c0_22 = arith.constant 0 : index
    %c0_23 = arith.constant 0 : index
    %18 = vector.load %arg2[%c0_19, %c0_20, %c0_21, %c0_22, %c0_23] : memref<1x2x8x16x16xbf16, #tpu.memory_space<vmem>>, vector<1x2x8x16x16xbf16>
    %19 = vector.shape_cast %18 : vector<1x2x8x16x16xbf16> to vector<2x8x16x16xbf16>
    %20 = vector.shape_cast %19 : vector<2x8x16x16xbf16> to vector<256x16xbf16>
    %c0_24 = arith.constant 0 : index
    %c0_25 = arith.constant 0 : index
    %c0_26 = arith.constant 0 : index
    %21 = vector.load %arg6[%c0_24, %c0_25, %c0_26] : memref<1x16x16xbf16, #tpu.memory_space<vmem>>, vector<1x16x16xbf16>
    %22 = vector.shape_cast %21 : vector<1x16x16xbf16> to vector<16x16xbf16>
    %cst_27 = arith.constant dense<0.000000e+00> : vector<256x16xf32>
    %23 = tpu.matmul %20, %22, %cst_27 {dimension_numbers = #tpu.dot_dimension_numbers<[1], [0], [0], [1], [0, 0, 1, 1], [], []>} : vector<256x16xbf16>, vector<16x16xbf16>, vector<256x16xf32> -> vector<256x16xf32>
    %c0_28 = arith.constant 0 : index
    %c0_29 = arith.constant 0 : index
    %c0_30 = arith.constant 0 : index
    %24 = vector.load %arg5[%c0_28, %c0_29, %c0_30] : memref<1x128x128xbf16, #tpu.memory_space<vmem>>, vector<1x128x128xbf16>
    %25 = vector.shape_cast %24 : vector<1x128x128xbf16> to vector<128x128xbf16>
    %26 = vector.extract_strided_slice %23 {offsets = [0, 0], sizes = [128, 16], strides = [1, 1]} : vector<256x16xf32> to vector<128x16xf32>
    %27 = arith.truncf %26 : vector<128x16xf32> to vector<128x16xbf16>
    %cst_31 = arith.constant dense<0.000000e+00> : vector<128x16xf32>
    %28 = tpu.matmul %25, %27, %cst_31 {dimension_numbers = #tpu.dot_dimension_numbers<[1], [0], [0], [1], [0, 0, 1, 1], [], []>} : vector<128x128xbf16>, vector<128x16xbf16>, vector<128x16xf32> -> vector<128x16xf32>
    %c0_32 = arith.constant 0 : index
    %c0_33 = arith.constant 0 : index
    %c0_34 = arith.constant 0 : index
    %c0_35 = arith.constant 0 : index
    %29 = vector.load %arg8[%c0_32, %c0_33, %c0_34, %c0_35] : memref<1x2x128x16xf32, #tpu.memory_space<vmem>>, vector<1x1x128x16xf32>
    %30 = vector.shape_cast %29 : vector<1x1x128x16xf32> to vector<128x16xf32>
    %31 = vector.shape_cast %28 : vector<128x16xf32> to vector<1x1x128x16xf32>
    tpu.vector_store %arg8[%c0_32, %c0_33, %c0_34, %c0_35], %31 {strides = array<i32>} : memref<1x2x128x16xf32, #tpu.memory_space<vmem>>, vector<1x1x128x16xf32>,
    %32 = vector.extract_strided_slice %23 {offsets = [128, 0], sizes = [128, 16], strides = [1, 1]} : vector<256x16xf32> to vector<128x16xf32>
    %33 = arith.truncf %32 : vector<128x16xf32> to vector<128x16xbf16>
    %cst_36 = arith.constant dense<0.000000e+00> : vector<128x16xf32>
    %34 = tpu.matmul %25, %33, %cst_36 {dimension_numbers = #tpu.dot_dimension_numbers<[1], [0], [0], [1], [0, 0, 1, 1], [], []>} : vector<128x128xbf16>, vector<128x16xbf16>, vector<128x16xf32> -> vector<128x16xf32>
    %c0_37 = arith.constant 0 : index
    %c1_38 = arith.constant 1 : index
    %c0_39 = arith.constant 0 : index
    %c0_40 = arith.constant 0 : index
    %35 = vector.load %arg8[%c0_37, %c1_38, %c0_39, %c0_40] : memref<1x2x128x16xf32, #tpu.memory_space<vmem>>, vector<1x1x128x16xf32>
    %36 = vector.shape_cast %35 : vector<1x1x128x16xf32> to vector<128x16xf32>
    %37 = vector.shape_cast %34 : vector<128x16xf32> to vector<1x1x128x16xf32>
    tpu.vector_store %arg8[%c0_37, %c1_38, %c0_39, %c0_40], %37 {strides = array<i32>} : memref<1x2x128x16xf32, #tpu.memory_space<vmem>>, vector<1x1x128x16xf32>,
    return
  }
  func.func @transform_0(%arg0: i32) -> (i32, i32, i32, i32, i32) {
    %c0_i32 = arith.constant 0 : i32
    %c0_i32_0 = arith.constant 0 : i32
    %c0_i32_1 = arith.constant 0 : i32
    %c0_i32_2 = arith.constant 0 : i32
    %c0_i32_3 = arith.constant 0 : i32
    return %arg0, %c0_i32, %c0_i32_0, %c0_i32_1, %c0_i32_2 : i32, i32, i32, i32, i32
  }
  func.func @transform_1(%arg0: i32) -> (i32, i32, i32, i32, i32) {
    %c0_i32 = arith.constant 0 : i32
    %c0_i32_0 = arith.constant 0 : i32
    %c0_i32_1 = arith.constant 0 : i32
    %c0_i32_2 = arith.constant 0 : i32
    %c0_i32_3 = arith.constant 0 : i32
    return %arg0, %c0_i32, %c0_i32_0, %c0_i32_1, %c0_i32_2 : i32, i32, i32, i32, i32
  }
  func.func @transform_2(%arg0: i32) -> (i32, i32, i32) {
    %c0_i32 = arith.constant 0 : i32
    %c0_i32_0 = arith.constant 0 : i32
    %c0_i32_1 = arith.constant 0 : i32
    return %arg0, %c0_i32, %c0_i32_0 : i32, i32, i32
  }
  func.func @transform_3(%arg0: i32) -> (i32, i32, i32) {
    %c0_i32 = arith.constant 0 : i32
    %c0_i32_0 = arith.constant 0 : i32
    %c0_i32_1 = arith.constant 0 : i32
    return %arg0, %c0_i32, %c0_i32_0 : i32, i32, i32
  }
  func.func @transform_4(%arg0: i32) -> (i32, i32, i32) {
    %c0_i32 = arith.constant 0 : i32
    %c0_i32_0 = arith.constant 0 : i32
    %c0_i32_1 = arith.constant 0 : i32
    return %arg0, %c0_i32, %c0_i32_0 : i32, i32, i32
  }
  func.func @transform_5(%arg0: i32) -> (i32, i32, i32) {
    %c0_i32 = arith.constant 0 : i32
    %c0_i32_0 = arith.constant 0 : i32
    %c0_i32_1 = arith.constant 0 : i32
    return %arg0, %c0_i32, %c0_i32_0 : i32, i32, i32
  }
  func.func @transform_6(%arg0: i32) -> (i32, i32, i32, i32) {
    %c0_i32 = arith.constant 0 : i32
    %c0_i32_0 = arith.constant 0 : i32
    %c0_i32_1 = arith.constant 0 : i32
    %c0_i32_2 = arith.constant 0 : i32
    return %arg0, %c0_i32, %c0_i32_0, %c0_i32_1 : i32, i32, i32, i32
  }
  func.func @transform_7(%arg0: i32) -> (i32, i32, i32, i32) {
    %c0_i32 = arith.constant 0 : i32
    %c0_i32_0 = arith.constant 0 : i32
    %c0_i32_1 = arith.constant 0 : i32
    %c0_i32_2 = arith.constant 0 : i32
    return %arg0, %c0_i32, %c0_i32_0, %c0_i32_1 : i32, i32, i32, i32
  }
}

</mosaic_0001>

<bundles_post_ra>
// kernel: tpu_custom_call.1
= control target key start
LH: loop header
LB: loop body
LE: loop exit
PB: predicated region body
PF: predicated region fallthrough
CT: control target
= control target key end

     0   :  { %s3614_s0 = inlined_call_operand.hbm [shape: f32[2,2,8,16,16], index: 0, kind: input, shape index: {}]   ;;  %s3615_s1 = inlined_call_operand.hbm [shape: bf16[2,2,8,16,16], index: 1, kind: input, shape index: {}]   ;;  %s3616_s2 = inlined_call_operand.hbm [shape: f32[2,128,128], index: 2, kind: input, shape index: {}]   ;;  %s3617_s3 = inlined_call_operand.hbm [shape: f32[2,16,16], index: 3, kind: input, shape index: {}]   ;;  %s3618_s4 = inlined_call_operand.hbm [shape: bf16[2,128,128], index: 4, kind: input, shape index: {}]   ;;  %s3619_s5 = inlined_call_operand.vmem [shape: bf16[2,16,16], index: 5, kind: input, shape index: {}]   ;;  %s3620_s6 = inlined_call_operand.vmem [shape: f32[2,2,128,16], index: 6, kind: output, shape index: {0}]   ;;  %s3621_s7 = inlined_call_operand.vmem [shape: f32[2,2,128,16], index: 7, kind: output, shape index: {1}]  }
   0x1   :  { %3629 = sst [smem:[#allocation16_spill]] %s3615_s1 }
   0x2   :  { %3630 = sst [smem:[#allocation17_spill]] %s3617_s3 }
   0x3   :  { %3631 = sst [smem:[#allocation18_spill]] %s3621_s7 }
   0x4   :  { %13 = vsyncpa [#allocation3], 0 }
   0x5   :  { %15 = vsyncpa [#allocation3 + $0x1], 0 }
   0x6   :  { %16 = vsyncpa [#allocation5], 0 }
   0x7   :  { %18 = vsyncpa [#allocation5 + $0x1], 0 }
   0x8   :  { %19 = vsyncpa [#allocation8], 0 }
   0x9   :  { %21 = vsyncpa [#allocation8 + $0x1], 0  ;;  %s2985_s24 = smov 0   ;;  %s2987_s25 = smov 0  }
   0xa   :  { %s2989_s26 = smov 0   ;;  %s2991_s27 = smov 0  }
   0xb LB: > { %3632 = sst [smem:[#allocation13_spill]] %s2930_s26  ;;  %s3004_s28 = sadd.s32 4294967295, %s2934_s27   ;;  %s2934_s27 = sphi %s2991_s27, %s3647_s27   ;;  %s2930_s26 = sphi %s2989_s26, %s3649_s26   ;;  %s2926_s25 = sphi %s2987_s25, %s3651_s25   ;;  %s2922_s24 = sphi %s2985_s24, %s3650_s24  }
   0xc   : > { %s3007_s29 = sadd.s32 1, %s2934_s27   ;;  %s34_s8 = sadd.s32 1, %s2930_s26 }
   0xd   : > { %3633 = sst [smem:[#allocation14_spill]] %s3007_s29  ;;  %s31_s30 = ssub.s32 %s2934_s27, %s3007_s29 }
   0xe   : > { %p32_p0 = scmp.eq.s32.totalorder %s31_s30, 0  ;;  %p41_p1 = scmp.ne.s32.totalorder %s2930_s26, %s2926_s25 }
   0xf   : > { %p42_p2 = scmp.eq.s32.totalorder %s2934_s27, 0  ;;  %p47_p3 = scmp.ne.s32.totalorder %s2926_s25, %s2922_s24 }
  0x10   : > { %s3017_s9 = scalar_select %p32_p0, %s2930_s26, %s34_s8  }
  0x11   : > { %p43_p4 = por %p42_p2, %p41_p1  ;;  %p48_p5 = scmp.eq.s32.totalorder %s3004_s28, 0 }
  0x12   : > { %3634 = sst [smem:[#allocation15_spill]] %s3017_s9  ;;  %p2680_p6 = scmp.lt.s32.totalorder %s2934_s27, 2 }
  0x13   : > { %p3021_p7 = por %p48_p5, %p47_p3  ;;  %s3026_s11 = sand.u32 1, %s2930_s26  }
  0x14   : > { %p3028_p8 = pnand %p2680_p6, %p43_p4  ;;  %s3623_s13 = sand.u32 1, %s2934_s27  }
  0x15   : > { %s3635_s10 = scalar_select %p3021_p7, 1, 0 }
  0x16   : > { %s2022_s14 = sshll.u32 %s3026_s11, 7  ;;  %s2154_s15 = sshll.u32 %s2934_s27, 11 }
  0x17   : > { %s278_s16 = scalar_lea.vmem [#allocation4], %s2022_s14  ;;  %s3637_s1 = sld [smem:[#allocation16_spill]] }
  0x18   : > { %s285_s17 = sshll.u32 %s278_s16, 4  ;;  %s3048_s21 = scalar_lea.sflag [#allocation5], %s3623_s13  ;;  %s3044_s17 = int_to_ptr.vmem [resolvable:$true] %s285_s17 }
  0x19   : > { %p3054_p10 = pneg %p3028_p8 }
  0x1d   : > { %s3042_s20 = scalar_lea.hbm %s3637_s1, %s2154_s15  ;;  %s2747_s8 = scalar_lea.hbm %s3637_s1, 4096 }
  0x1e   : > { %s2742_s22 = scalar_lea.hbm %s3042_s20, 2048  ;;  %p2748_p13 = scmp.lt.u32.totalorder %s3042_s20, %s3637_s1 }
  0x1f   : > { %p2743_p9 = scmp.ne.s32.totalorder %s3042_s20, %s2742_s22  ;;  %p2749_p0 = scmp.lt.u32.totalorder %s2747_s8, %s2742_s22 }
  0x20   : > { %p2751_p2 = scmp.lt.u32.totalorder %s2742_s22, %s3042_s20 }
  0x21   : > { %p2745_p11 = pnand %p3054_p10, %p2743_p9  ;;  %p2750_p1 = por %p2749_p0, %p2748_p13 }
  0x23   : > { %p2746_p12 = pneg %p2745_p11  ;;  %p2752_p3 = por %p2751_p2, %p2750_p1 }
  0x25   : > { %p2753_p4 = pnand %p2752_p3, %p2746_p12 }
  0x27   : > { %2756 = shalt.err (!%p2753_p4)
}
  0x28   : > { %s2757_s19 = scalar_lea.vmem %s3044_s17, 2048  ;;  %s2936_s24 = smov [#allocation4]  }
  0x29   : > { %p2758_p5 = scmp.ne.s32.totalorder %s3044_s17, %s2757_s19  ;;  %s2762_s30 = sshll.u32 %s2936_s24, 4  ;;  %s2763_s30 = int_to_ptr.vmem [resolvable:$false] %s2762_s30 }
  0x2a   : > { %s2764_s16 = scalar_lea.vmem %s2763_s30, 4096  ;;  %p2765_p11 = scmp.lt.s32.totalorder %s3044_s17, %s2763_s30 }
  0x2b   : > { %p2760_p6 = pnand %p2758_p5, %p3054_p10  ;;  %p2766_p7 = scmp.lt.s32.totalorder %s2764_s16, %s2757_s19 }
  0x2d   : > { %p2761_p9 = pneg %p2760_p6  ;;  %p2767_p13 = por %p2766_p7, %p2765_p11 }
  0x2f   : > { %p2768_p0 = pnand %p2767_p13, %p2761_p9 }
  0x31   : > { %2771 = shalt.err (!%p2768_p0)
}
  0x32   : > { %s3624_s22 = smov 64   ;;  %s3625_s8 = smov 4  }
  0x33   : > { %2670 = dma.hbm_to_vmem [thread:$0]  (!%p3028_p8), %s3042_s20, 2048, %s3044_s17, %s3048_s21, %s3624_s22, %s3624_s22, %s3625_s8  }
  0x34   : > { %s3086_s24 = scalar_lea.hbm %s3616_s2, %s2154_s15  ;;  %s299_s30 = scalar_lea.vmem [#allocation6], %s2022_s14 }
  0x35   : > { %s306_s16 = sshll.u32 %s299_s30, 4  ;;  %p2034_p7 = scmp.ge.s32.totalorder %s2934_s27, 1  ;;  %s3091_s16 = int_to_ptr.vmem [resolvable:$true] %s306_s16 }
  0x36   : > { %p364_p12 = scmp.lt.s32.totalorder %s2934_s27, 3  ;;  %s2028_s1 = sshll.u32 %s3026_s11, 4 }
  0x37   : > { %s2156_s17 = sshll.u32 %s2934_s27, 8  ;;  %s3640_s3 = sld [smem:[#allocation17_spill]] }
  0x38   : > { %p3094_p1 = pnand %p2034_p7, %p364_p12  ;;  %s320_s14 = scalar_lea.vmem [#allocation7], %s2028_s1 }
  0x39   : > { %s327_s15 = sshll.u32 %s320_s14, 4  ;;  %s2019_s19 = sshll.u32 %s3026_s11, 8  ;;  %s3105_s15 = int_to_ptr.vmem [resolvable:$true] %s327_s15 }
  0x3a   : > { %s3639_s13 = scalar_select %p3094_p1, 1, 0 }
  0x3b   : > { %s3641_s30 = sand.u32 1, %s2934_s27  }
  0x3c   : > { %s3110_s8 = scalar_lea.sflag [#allocation8], %s3641_s30 }
  0x3d   : > { %s3103_s18 = scalar_lea.hbm %s3640_s3, %s2156_s17  ;;  %s2777_s20 = scalar_lea.hbm %s3640_s3, 512 }
  0x3e   : > { %s2772_s9 = scalar_lea.hbm %s3103_s18, 256  ;;  %p2778_p5 = scmp.lt.u32.totalorder %s3103_s18, %s3640_s3 }
  0x3f   : > { %p2773_p2 = scmp.ne.s32.totalorder %s3103_s18, %s2772_s9  ;;  %p2779_p6 = scmp.lt.u32.totalorder %s2777_s20, %s2772_s9 }
  0x40   : > { %p2781_p11 = scmp.lt.u32.totalorder %s2772_s9, %s3103_s18 }
  0x41   : > { %p2775_p3 = pnand %p2773_p2, %p3054_p10  ;;  %p2780_p9 = por %p2779_p6, %p2778_p5 }
  0x43   : > { %p2776_p4 = pneg %p2775_p3  ;;  %p2782_p13 = por %p2781_p11, %p2780_p9 }
  0x45   : > { %p2783_p0 = pnand %p2782_p13, %p2776_p4 }
  0x47   : > { %2786 = shalt.err (!%p2783_p0)
}
  0x48   : > { %s2787_s1 = scalar_lea.vmem %s3105_s15, 256  ;;  %s2939_s14 = smov [#allocation7]  }
  0x49   : > { %p2788_p7 = scmp.ne.s32.totalorder %s3105_s15, %s2787_s1  ;;  %s2792_s30 = sshll.u32 %s2939_s14, 4  ;;  %s2793_s30 = int_to_ptr.vmem [resolvable:$false] %s2792_s30 }
  0x4a   : > { %s2794_s26 = scalar_lea.vmem %s2793_s30, 512  ;;  %p2795_p3 = scmp.lt.s32.totalorder %s3105_s15, %s2793_s30 }
  0x4b   : > { %p2790_p12 = pnand %p2788_p7, %p3054_p10  ;;  %p2796_p1 = scmp.lt.s32.totalorder %s2794_s26, %s2787_s1 }
  0x4d   : > { %p2791_p2 = pneg %p2790_p12  ;;  %p2797_p5 = por %p2796_p1, %p2795_p3 }
  0x4f   : > { %p2798_p6 = pnand %p2797_p5, %p2791_p2 }
  0x51   : > { %2801 = shalt.err (!%p2798_p6)
}
  0x52   : > { %s2940_s29 = smov 128   ;;  %s2941_s9 = smov 8  }
  0x53   : > { %2676 = dma.hbm_to_vmem [thread:$0]  (!%p3028_p8), %s3103_s18, 256, %s3105_s15, %s3110_s8, %s2940_s29, %s2940_s29, %s2941_s9  }
  0x54   : > { %s2153_s22 = sshll.u32 %s2934_s27, 12  ;;  %s257_s14 = scalar_lea.vmem [#allocation2], %s2019_s19 }
  0x55   : > { %s3141_s1 = scalar_lea.hbm %s3614_s0, %s2153_s22  ;;  %s264_s30 = sshll.u32 %s257_s14, 4  ;;  %s3145_s30 = int_to_ptr.vmem [resolvable:$true] %s264_s30 }
  0x56   : > { %s2031_s26 = sshll.u32 %s3026_s11, 6  ;;  %s254_s3 = scalar_lea.sflag [#allocation3], %s3026_s11 }
  0x57   : > { %s2802_s7 = scalar_lea.hbm %s3141_s1, 4096  ;;  %s2807_s22 = scalar_lea.hbm %s3614_s0, 8192 }
  0x58   : > { %p2803_p1 = scmp.ne.s32.totalorder %s3141_s1, %s2802_s7  ;;  %p2808_p11 = scmp.lt.u32.totalorder %s3141_s1, %s3614_s0 }
  0x59   : > { %p2809_p13 = scmp.lt.u32.totalorder %s2807_s22, %s2802_s7  ;;  %p2811_p7 = scmp.lt.u32.totalorder %s2802_s7, %s3141_s1 }
  0x5a   : > { %p2805_p4 = pnand %p2803_p1, %p3054_p10 }
  0x5b   : > { %p2810_p0 = por %p2809_p13, %p2808_p11 }
  0x5c   : > { %p2806_p9 = pneg %p2805_p4 }
  0x5d   : > { %p2812_p12 = por %p2811_p7, %p2810_p0 }
  0x5f   : > { %p2813_p2 = pnand %p2812_p12, %p2806_p9 }
  0x61   : > { %2816 = shalt.err (!%p2813_p2)
}
  0x62   : > { %s2817_s19 = scalar_lea.vmem %s3145_s30, 4096  ;;  %s2942_s14 = smov [#allocation2]  }
  0x63   : > { %p2818_p3 = scmp.ne.s32.totalorder %s3145_s30, %s2817_s19  ;;  %s2822_s18 = sshll.u32 %s2942_s14, 4  ;;  %s2823_s18 = int_to_ptr.vmem [resolvable:$false] %s2822_s18 }
  0x64   : > { %s2824_s15 = scalar_lea.vmem %s2823_s18, 8192  ;;  %p2825_p1 = scmp.lt.s32.totalorder %s3145_s30, %s2823_s18 }
  0x65   : > { %p2820_p5 = pnand %p2818_p3, %p3054_p10  ;;  %p2826_p4 = scmp.lt.s32.totalorder %s2824_s15, %s2817_s19 }
  0x67   : > { %p2821_p6 = pneg %p2820_p5  ;;  %p2827_p11 = por %p2826_p4, %p2825_p1 }
  0x69   : > { %p2828_p13 = pnand %p2827_p11, %p2821_p6 }
  0x6b   : > { %2831 = shalt.err (!%p2828_p13)
}
  0x6c   : > { %2667 = dma.hbm_to_vmem [thread:$0]  (!%p3028_p8), %s3141_s1, 4096, %s3145_s30, %s254_s3, %s2940_s29, %s2940_s29, %s2941_s9  }
  0x6d   : > { %s2832_s7 = scalar_lea.hbm %s3086_s24, 2048  ;;  %s2837_s20 = scalar_lea.hbm %s3616_s2, 4096 }
  0x6e   : > { %p2833_p9 = scmp.ne.s32.totalorder %s3086_s24, %s2832_s7  ;;  %p2838_p12 = scmp.lt.u32.totalorder %s3086_s24, %s3616_s2 }
  0x6f   : > { %p2839_p2 = scmp.lt.u32.totalorder %s2837_s20, %s2832_s7  ;;  %p2841_p5 = scmp.lt.u32.totalorder %s2832_s7, %s3086_s24 }
  0x70   : > { %p2835_p0 = pnand %p2833_p9, %p3054_p10 }
  0x71   : > { %p2840_p3 = por %p2839_p2, %p2838_p12 }
  0x72   : > { %p2836_p7 = pneg %p2835_p0 }
  0x73   : > { %p2842_p6 = por %p2841_p5, %p2840_p3 }
  0x75   : > { %p2843_p1 = pnand %p2842_p6, %p2836_p7 }
  0x77   : > { %2846 = shalt.err (!%p2843_p1)
}
  0x78   : > { %s2847_s3 = scalar_lea.vmem %s3091_s16, 2048  ;;  %s2943_s1 = smov [#allocation6]  }
  0x79   : > { %p2848_p4 = scmp.ne.s32.totalorder %s3091_s16, %s2847_s3  ;;  %s2852_s30 = sshll.u32 %s2943_s1, 4  ;;  %s2853_s30 = int_to_ptr.vmem [resolvable:$false] %s2852_s30 }
  0x7a   : > { %s2854_s18 = scalar_lea.vmem %s2853_s30, 4096  ;;  %p2855_p9 = scmp.lt.s32.totalorder %s3091_s16, %s2853_s30 }
  0x7b   : > { %p2850_p11 = pnand %p2848_p4, %p3054_p10  ;;  %p2856_p0 = scmp.lt.s32.totalorder %s2854_s18, %s2847_s3 }
  0x7d   : > { %p2851_p13 = pneg %p2850_p11  ;;  %p2857_p12 = por %p2856_p0, %p2855_p9 }
  0x7f   : > { %p2858_p2 = pnand %p2857_p12, %p2851_p13 }
  0x81   : > { %2861 = shalt.err (!%p2858_p2)
}
  0x82   : > { %2673 = dma.hbm_to_vmem [thread:$0]  (!%p3028_p8), %s3086_s24, 2048, %s3091_s16, %s3048_s21, %s2940_s29, %s2940_s29, %s2941_s9  }
  0x83   : > { %s2157_s15 = sshll.u32 %s2934_s27, 10  ;;  %s341_s20 = scalar_lea.vmem [#allocation9], %s2031_s26 }
  0x84   : > { %s3204_s17 = scalar_lea.hbm %s3618_s4, %s2157_s15  ;;  %s348_s19 = sshll.u32 %s341_s20, 4  ;;  %s3208_s19 = int_to_ptr.vmem [resolvable:$true] %s348_s19 }
  0x85   : > { %s2862_s14 = scalar_lea.hbm %s3204_s17, 1024  ;;  %s2867_s24 = scalar_lea.hbm %s3618_s4, 2048 }
  0x86   : > { %p2863_p7 = scmp.ne.s32.totalorder %s3204_s17, %s2862_s14  ;;  %p2868_p6 = scmp.lt.u32.totalorder %s3204_s17, %s3618_s4 }
  0x87   : > { %p2869_p1 = scmp.lt.u32.totalorder %s2867_s24, %s2862_s14  ;;  %p2871_p11 = scmp.lt.u32.totalorder %s2862_s14, %s3204_s17 }
  0x88   : > { %p2865_p3 = pnand %p2863_p7, %p3054_p10 }
  0x89   : > { %p2870_p4 = por %p2869_p1, %p2868_p6 }
  0x8a   : > { %p2866_p5 = pneg %p2865_p3 }
  0x8b   : > { %p2872_p13 = por %p2871_p11, %p2870_p4 }
  0x8d   : > { %p2873_p9 = pnand %p2872_p13, %p2866_p5 }
  0x8f   : > { %2876 = shalt.err (!%p2873_p9)
}
  0x90   : > { %s2877_s11 = scalar_lea.vmem %s3208_s19, 1024  ;;  %s2944_s9 = smov [#allocation9]  }
  0x91   : > { %p2878_p0 = scmp.ne.s32.totalorder %s3208_s19, %s2877_s11  ;;  %s2882_s26 = sshll.u32 %s2944_s9, 4  ;;  %s2883_s26 = int_to_ptr.vmem [resolvable:$false] %s2882_s26 }
  0x92   : > { %s2884_s3 = scalar_lea.vmem %s2883_s26, 2048  ;;  %p2885_p7 = scmp.lt.s32.totalorder %s3208_s19, %s2883_s26 }
  0x93   : > { %p2880_p12 = pnand %p2878_p0, %p3054_p10  ;;  %p2886_p3 = scmp.lt.s32.totalorder %s2884_s3, %s2877_s11 }
  0x95   : > { %p2881_p2 = pneg %p2880_p12  ;;  %p2887_p6 = por %p2886_p3, %p2885_p7 }
  0x97   : > { %p2888_p1 = pnand %p2887_p6, %p2881_p2 }
  0x99   : > { %2891 = shalt.err (!%p2888_p1)
}
  0x9a   : > { %s3642_s1 = smov 4   ;;  %s3643_s30 = smov 64  }
  0x9b   : > { %2679 = dma.hbm_to_vmem [thread:$0]  (!%p3028_p8), %s3204_s17, 1024, %s3208_s19, %s3110_s8, %s3643_s30, %s3643_s30, %s3642_s1  }
  0x9c   : > { %p3644_p10 = scmp.ne.s32.totalorder %s3639_s13, 0 }
  0x9d   : > { %s3238_s23 = sand.u32 (!%p3644_p10), 1, %s2926_s25   ;;  %p3645_p5 = scmp.ne.s32.totalorder (!%p3644_p10), %s3635_s10, 0 }
  0x9e   : > { %368 = sbr.rel (%p3644_p10) target bundleno = 757 (0x2f5), region = 44  ;;  %s2035_s18 = sshll.u32 (!%p3644_p10), %s3238_s23, 8 }
  0x9f   : > { %s371_s15 = scalar_lea.sflag (!%p3644_p10), [#allocation3], %s3238_s23  ;;  %s3242_s7 = scalar_lea.vmem (!%p3644_p10), [#allocation2], %s2035_s18 }
  0xa5   : > { %2909 = dma.done.wait (%p3645_p5), %s371_s15, 4096  }
  0xa6   : > { %2911 = vsyncadd (%p3645_p5), %s371_s15, 4294963200  ;;  %s379_s12 = sand.u32 1, %s3004_s28   ;;  %s2036_s13 = sshll.u32 %s3238_s23, 7 }
  0xa7   : > { %s380_s8 = scalar_lea.sflag [#allocation5], %s379_s12  ;;  %s3250_s22 = scalar_lea.vmem [#allocation4], %s2036_s13 }
  0xa8   : > { %2913 = dma.done.wait (%p3645_p5), %s380_s8, 4096  }
  0xa9   : > { %2915 = vsyncadd (%p3645_p5), %s380_s8, 4294963200  ;;  %s2038_s17 = sshll.u32 %s3238_s23, 4  ;;  %s3257_s20 = scalar_lea.vmem [#allocation6], %s2036_s13 }
  0xaa   : > { %s398_s19 = scalar_lea.sflag [#allocation8], %s379_s12  ;;  %s401_s14 = scalar_lea.vmem [#allocation7], %s2038_s17 }
  0xab   : > { %2917 = dma.done.wait (%p3645_p5), %s398_s19, 1280  }
  0xac   : > { %2919 = vsyncadd (%p3645_p5), %s398_s19, 4294966016  ;;  %p471_p8 = scmp.lt.s32.totalorder %s3004_s28, 1  ;;  %vm521_vm0 = vcmask 130048   ;;  %v519_v0 = vld [vmem:[%s401_s14] sm:$0xff]  ;;  %v520_v1 = vld [vmem:[%s401_s14 + $0x8] sm:$0xff]  ;;  %s2039_s16 = sshll.u32 %s3238_s23, 6 }
  0xad   : > { %v487_v2 = vld [vmem:[%s3242_s7] sm:$0xff]  ;;  %v2570_v3 = vpack.c.bf16 %v520_v1, %v519_v0  ;;  %v488_v4 = vld [vmem:[%s3242_s7 + $0x8] sm:$0xff]  ;;  %v489_v6 = vld [vmem:[%s3242_s7 + $0x10] sm:$0xff]  ;;  %s3372_s29 = scalar_lea.vmem [#allocation9], %s2039_s16  ;;  %s3646_s23 = sld [smem:[#allocation18_spill]] }
  0xae   : > { %s3653_s28 = smov (!%p471_p8, %s3004_s28), 1  ;;  %2312 = vmatprep.mubr.msk.f32.mxu0 %vm521_vm0, %v487_v2  ;;  %v490_v7 = vld [vmem:[%s3242_s7 + $0x18] sm:$0xff]  ;;  %v491_v8 = vld [vmem:[%s3242_s7 + $0x20] sm:$0xff]  ;;  %v492_v9 = vld [vmem:[%s3242_s7 + $0x28] sm:$0xff] }
  0xaf   : > { %s2158_s27 = sshll.u32 %s3653_s28, 3  ;;  %2571 = vmatprep.subr.bf16.mxu0 %v2570_v3  ;;  %v493_v10 = vld [vmem:[%s3242_s7 + $0x30] sm:$0xff]  ;;  %v494_v11 = vld [vmem:[%s3242_s7 + $0x38] sm:$0xff]  ;;  %v495_v12 = vld [vmem:[%s3242_s7 + $0x40] sm:$0xff]  ;;  %s2159_s11 = sshll.u32 %s3653_s28, 8 }
  0xb0   : > { %s475_s24 = scalar_lea.vmem %s3619_s5, %s2158_s27  ;;  %2573 = vmatpush3.bf16.msra.mxu0 %v2570_v3  ;;  %v496_v13 = vld [vmem:[%s3242_s7 + $0x48] sm:$0xff]  ;;  %v497_v14 = vld [vmem:[%s3242_s7 + $0x50] sm:$0xff]  ;;  %v498_v15 = vld [vmem:[%s3242_s7 + $0x58] sm:$0xff]  ;;  %s3464_s3 = scalar_lea.vmem %s3620_s6, %s2159_s11 }
  0xb1   : > { %v2717_v5 = vld [vmem:[%s475_s24] sm:$0xff]   ;;  %v500_v17 = vld [vmem:[%s3242_s7 + $0x68] sm:$0xff]  ;;  %v501_v18 = vld [vmem:[%s3242_s7 + $0x70] sm:$0xff] }
  0xb2   : > { %2472 = vmatprep.subr.bf16.mxu0 %v2717_v5  ;;  %v499_v16 = vld [vmem:[%s3242_s7 + $0x60] sm:$0xff]  ;;  %v502_v19 = vld [vmem:[%s3242_s7 + $0x78] sm:$0xff]  ;;  %v504_v21 = vld [vmem:[%s3242_s7 + $0x88] sm:$0xff] }
  0xb3   : > { %2313 = vmatmul.mubr.msk.f32.vlgmr.msra.gmra.mrb[0].mxu0 %vm521_vm0, %v488_v4  ;;  %v503_v20 = vld [vmem:[%s3242_s7 + $0x80] sm:$0xff]  ;;  %v505_v22 = vld [vmem:[%s3242_s7 + $0x90] sm:$0xff]  ;;  %v506_v23 = vld [vmem:[%s3242_s7 + $0x98] sm:$0xff]  ;;  %s3535_s18 = scalar_lea.vmem %s3646_s23, %s2159_s11 }
  0xb4   : > { %2315 = vmatprep.mubr.msk.f32.mxu0 %vm521_vm0, %v489_v6  ;;  %2473 = vmatpush3.bf16.msra.mxu0 %v2717_v5  ;;  %v507_v24 = vld [vmem:[%s3242_s7 + $0xa0] sm:$0xff]  ;;  %v508_v25 = vld [vmem:[%s3242_s7 + $0xa8] sm:$0xff]  ;;  %v509_v26 = vld [vmem:[%s3242_s7 + $0xb0] sm:$0xff] }
  0xb5   : > { %v510_v27 = vld [vmem:[%s3242_s7 + $0xb8] sm:$0xff]  ;;  %v511_v28 = vld [vmem:[%s3242_s7 + $0xc0] sm:$0xff]  ;;  %v512_v29 = vld [vmem:[%s3242_s7 + $0xc8] sm:$0xff] }
  0xb6   : > { %v513_v30 = vld [vmem:[%s3242_s7 + $0xd0] sm:$0xff]  ;;  %v514_v31 = vld [vmem:[%s3242_s7 + $0xd8] sm:$0xff]  ;;  %v515_v32 = vld [vmem:[%s3242_s7 + $0xe0] sm:$0xff] }
  0xb7   : > { %2316 = vmatmul.mubr.msk.f32.gmra.mrb[2].mxu0 %vm521_vm0, %v490_v7  ;;  %v516_v33 = vld [vmem:[%s3242_s7 + $0xe8] sm:$0xff]  ;;  %v517_v34 = vld [vmem:[%s3242_s7 + $0xf0] sm:$0xff]  ;;  %v518_v35 = vld [vmem:[%s3242_s7 + $0xf8] sm:$0xff] }
  0xb8   : > { %2318 = vmatprep.mubr.msk.f32.mxu0 %vm521_vm0, %v491_v8  ;;  %v2718_v36 = vld [vmem:[%s3250_s22] sm:$0xff]   ;;  %v2719_v37 = vld [vmem:[%s3250_s22 + $0x8] sm:$0xff]   ;;  %v2720_v38 = vld [vmem:[%s3250_s22 + $0x10] sm:$0xff]  }
  0xb9   : > { %v2721_v39 = vld [vmem:[%s3250_s22 + $0x18] sm:$0xff]   ;;  %v2722_v40 = vld [vmem:[%s3250_s22 + $0x20] sm:$0xff]   ;;  %v2723_v41 = vld [vmem:[%s3250_s22 + $0x28] sm:$0xff]  }
  0xba   : > { %v2724_v42 = vld [vmem:[%s3250_s22 + $0x30] sm:$0xff]   ;;  %v2725_v43 = vld [vmem:[%s3250_s22 + $0x38] sm:$0xff]   ;;  %v2726_v44 = vld [vmem:[%s3250_s22 + $0x40] sm:$0xff]  }
  0xbb   : > { %2319 = vmatmul.mubr.msk.f32.gmra.mrb[4].mxu0 %vm521_vm0, %v492_v9  ;;  %v2727_v45 = vld [vmem:[%s3250_s22 + $0x48] sm:$0xff]   ;;  %v2728_v46 = vld [vmem:[%s3250_s22 + $0x50] sm:$0xff]   ;;  %v2729_v47 = vld [vmem:[%s3250_s22 + $0x58] sm:$0xff]  }
  0xbc   : > { %2321 = vmatprep.mubr.msk.f32.mxu0 %vm521_vm0, %v493_v10  ;;  %v2730_v48 = vld [vmem:[%s3250_s22 + $0x60] sm:$0xff]   ;;  %v2731_v49 = vld [vmem:[%s3250_s22 + $0x68] sm:$0xff]   ;;  %v2732_v50 = vld [vmem:[%s3250_s22 + $0x70] sm:$0xff]  }
  0xbd   : > { %v2733_v51 = vld [vmem:[%s3250_s22 + $0x78] sm:$0xff]   ;;  %v3367_v52 = vld [vmem:[%s3257_s20] sm:$0xff] }
  0xbe   : > { %2392 = vmatprep.mubr.f32.mxu1 %v3367_v52  ;;  %v3375_v53 = vld [vmem:[%s3372_s29] sm:$0xff]  }
  0xbf   : > { %2322 = vmatmul.mubr.msk.f32.gmra.mrb[6].mxu0 %vm521_vm0, %v494_v11 }
  0xc0   : > { %2324 = vmatprep.mubr.msk.f32.mxu0 %vm521_vm0, %v495_v12 }
  0xc3   : > { %2325 = vmatmul.mubr.msk.f32.gmra.mrb[8].mxu0 %vm521_vm0, %v496_v13 }
  0xc4   : > { %2327 = vmatprep.mubr.msk.f32.mxu0 %vm521_vm0, %v497_v14 }
  0xc7   : > { %2328 = vmatmul.mubr.msk.f32.gmra.mrb[10].mxu0 %vm521_vm0, %v498_v15 }
  0xc8   : > { %2330 = vmatprep.mubr.msk.f32.mxu0 %vm521_vm0, %v499_v16  ;;  %v3379_v16 = vld [vmem:[%s3257_s20 + $0x8] sm:$0xff] }
  0xcb   : > { %2331 = vmatmul.mubr.msk.f32.gmra.mrb[12].mxu0 %vm521_vm0, %v500_v17 }
  0xcc   : > { %2333 = vmatprep.mubr.msk.f32.mxu0 %vm521_vm0, %v501_v18  ;;  %v3382_v18 = vld [vmem:[%s3257_s20 + $0x10] sm:$0xff] }
  0xcf   : > { %2334 = vmatmul.mubr.msk.f32.gmra.mrb[14].mxu0 %vm521_vm0, %v502_v19 }
  0xd0   : > { %2336 = vmatprep.mubr.msk.f32.mxu0 %vm521_vm0, %v503_v20 }
  0xd3   : > { %2337 = vmatmul.mubr.msk.f32.gmra.mrb[16].mxu0 %vm521_vm0, %v504_v21  ;;  %v3387_v21 = vld [vmem:[%s3257_s20 + $0x18] sm:$0xff] }
  0xd4   : > { %2339 = vmatprep.mubr.msk.f32.mxu0 %vm521_vm0, %v505_v22 }
  0xd7   : > { %2340 = vmatmul.mubr.msk.f32.gmra.mrb[18].mxu0 %vm521_vm0, %v506_v23  ;;  %v3390_v23 = vld [vmem:[%s3257_s20 + $0x20] sm:$0xff] }
  0xd8   : > { %2342 = vmatprep.mubr.msk.f32.mxu0 %vm521_vm0, %v507_v24 }
  0xdb   : > { %2343 = vmatmul.mubr.msk.f32.gmra.mrb[20].mxu0 %vm521_vm0, %v508_v25 }
  0xdc   : > { %2345 = vmatprep.mubr.msk.f32.mxu0 %vm521_vm0, %v509_v26  ;;  %v3395_v26 = vld [vmem:[%s3257_s20 + $0x28] sm:$0xff] }
  0xdf   : > { %2346 = vmatmul.mubr.msk.f32.gmra.mrb[22].mxu0 %vm521_vm0, %v510_v27 }
  0xe0   : > { %2348 = vmatprep.mubr.msk.f32.mxu0 %vm521_vm0, %v511_v28  ;;  %v3398_v28 = vld [vmem:[%s3257_s20 + $0x30] sm:$0xff] }
  0xe3   : > { %2349 = vmatmul.mubr.msk.f32.gmra.mrb[24].mxu0 %vm521_vm0, %v512_v29 }
  0xe4   : > { %2351 = vmatprep.mubr.msk.f32.mxu0 %vm521_vm0, %v513_v30 }
  0xe7   : > { %2352 = vmatmul.mubr.msk.f32.gmra.mrb[26].mxu0 %vm521_vm0, %v514_v31  ;;  %v3403_v31 = vld [vmem:[%s3257_s20 + $0x38] sm:$0xff] }
  0xe8   : > { %2354 = vmatprep.mubr.msk.f32.mxu0 %vm521_vm0, %v515_v32 }
  0xeb   : > { %2355 = vmatmul.mubr.msk.f32.gmra.mrb[28].mxu0 %vm521_vm0, %v516_v33  ;;  %v3406_v33 = vld [vmem:[%s3257_s20 + $0x40] sm:$0xff] }
  0xec   : > { %2357 = vmatprep.mubr.msk.f32.mxu0 %vm521_vm0, %v517_v34 }
  0xef   : > { %2358 = vmatmul.mubr.msk.f32.gmra.mrb[30].mxu0 %vm521_vm0, %v518_v35 }
  0xf0   : > { %2474 = vmatprep.mubr.msk.bf16.mxu0 %vm521_vm0, %v2718_v36  ;;  %v3411_v36 = vld [vmem:[%s3257_s20 + $0x48] sm:$0xff] }
  0xf3   : > { %2475 = vmatmul.mubr.msk.bf16.vlgmr.msra.gmra.mrb[32].mxu0 %vm521_vm0, %v2719_v37 }
  0xf4   : > { %2478 = vmatprep.mubr.msk.bf16.mxu0 %vm521_vm0, %v2720_v38  ;;  %v3414_v38 = vld [vmem:[%s3257_s20 + $0x50] sm:$0xff] }
  0xfb   : > { %2479 = vmatmul.mubr.msk.bf16.gmra.mrb[36].mxu0 %vm521_vm0, %v2721_v39 }
  0xfc   : > { %2482 = vmatprep.mubr.msk.bf16.mxu0 %vm521_vm0, %v2722_v40 }
 0x103   : > { %2483 = vmatmul.mubr.msk.bf16.gmra.mrb[40].mxu0 %vm521_vm0, %v2723_v41  ;;  %v3419_v41 = vld [vmem:[%s3257_s20 + $0x58] sm:$0xff] }
 0x104   : > { %2486 = vmatprep.mubr.msk.bf16.mxu0 %vm521_vm0, %v2724_v42 }
 0x10b   : > { %2487 = vmatmul.mubr.msk.bf16.gmra.mrb[44].mxu0 %vm521_vm0, %v2725_v43  ;;  %v3422_v43 = vld [vmem:[%s3257_s20 + $0x60] sm:$0xff] }
 0x10c   : > { %2490 = vmatprep.mubr.msk.bf16.mxu0 %vm521_vm0, %v2726_v44 }
 0x113   : > { %2491 = vmatmul.mubr.msk.bf16.gmra.mrb[48].mxu0 %vm521_vm0, %v2727_v45 }
 0x114   : > { %2494 = vmatprep.mubr.msk.bf16.mxu0 %vm521_vm0, %v2728_v46  ;;  %v3427_v46 = vld [vmem:[%s3257_s20 + $0x68] sm:$0xff] }
 0x11b   : > { %2495 = vmatmul.mubr.msk.bf16.gmra.mrb[52].mxu0 %vm521_vm0, %v2729_v47 }
 0x11c   : > { %2498 = vmatprep.mubr.msk.bf16.mxu0 %vm521_vm0, %v2730_v48  ;;  %v857_v48 = vld [vmem:[%s3257_s20 + $0x70] sm:$0xff] }
 0x123   : > { %2499 = vmatmul.mubr.msk.bf16.gmra.mrb[56].mxu0 %vm521_vm0, %v2731_v49 }
 0x124   : > { %2502 = vmatprep.mubr.msk.bf16.mxu0 %vm521_vm0, %v2732_v50 }
 0x12b   : > { %2503 = vmatmul.mubr.msk.bf16.gmra.mrb[60].mxu0 %vm521_vm0, %v2733_v51  ;;  %v858_v51 = vld [vmem:[%s3257_s20 + $0x78] sm:$0xff] }
 0x12c   : > { %2554 = vmatprep.mubr.bf16.mxu0 %v3375_v53 }
 0x186   : > { %v2314_v54 = vpop.f32.mrb[0].mxu0 }
 0x187   : > { %v684_v55 = vpop.f32.mrb[1].mxu0 }
 0x188   : > { %v2574_v56 = vpack.c.bf16 %v2314_v54, %v684_v55 }
 0x18a   : > { %v2317_v57 = vpop.f32.mrb[2].mxu0  ;;  %2575 = vmatprep.subr.bf16.mxu1 %v2574_v56 }
 0x18b   : > { %v694_v58 = vpop.f32.mrb[3].mxu0  ;;  %2577 = vmatpush3.bf16.msra.mxu1 %v2574_v56 }
 0x18c   : > { %v2578_v59 = vpack.c.bf16 %v2317_v57, %v694_v58 }
 0x18e   : > { %v2320_v60 = vpop.f32.mrb[4].mxu0  ;;  %2579 = vmatprep.subr.bf16.mxu1 %v2578_v59 }
 0x18f   : > { %v704_v61 = vpop.f32.mrb[5].mxu0  ;;  %2581 = vmatpush3.bf16.msra.mxu1 %v2578_v59 }
 0x190   : > { %v2582_v62 = vpack.c.bf16 %v2320_v60, %v704_v61 }
 0x192   : > { %v2323_v63 = vpop.f32.mrb[6].mxu0  ;;  %2583 = vmatprep.subr.bf16.mxu1 %v2582_v62 }
 0x193   : > { %v714_v0 = vpop.f32.mrb[7].mxu0  ;;  %2585 = vmatpush3.bf16.msra.mxu1 %v2582_v62 }
 0x194   : > { %v2586_v1 = vpack.c.bf16 %v2323_v63, %v714_v0 }
 0x196   : > { %v2326_v2 = vpop.f32.mrb[8].mxu0  ;;  %2587 = vmatprep.subr.bf16.mxu1 %v2586_v1 }
 0x197   : > { %v724_v3 = vpop.f32.mrb[9].mxu0  ;;  %2589 = vmatpush3.bf16.msra.mxu1 %v2586_v1 }
 0x198   : > { %v2590_v4 = vpack.c.bf16 %v2326_v2, %v724_v3 }
 0x19a   : > { %v2329_v5 = vpop.f32.mrb[10].mxu0  ;;  %2591 = vmatprep.subr.bf16.mxu1 %v2590_v4 }
 0x19b   : > { %v734_v6 = vpop.f32.mrb[11].mxu0  ;;  %2593 = vmatpush3.bf16.msra.mxu1 %v2590_v4 }
 0x19c   : > { %v2594_v7 = vpack.c.bf16 %v2329_v5, %v734_v6 }
 0x19e   : > { %v2332_v8 = vpop.f32.mrb[12].mxu0  ;;  %2595 = vmatprep.subr.bf16.mxu1 %v2594_v7 }
 0x19f   : > { %v744_v9 = vpop.f32.mrb[13].mxu0  ;;  %2597 = vmatpush3.bf16.msra.mxu1 %v2594_v7 }
 0x1a0   : > { %v2598_v10 = vpack.c.bf16 %v2332_v8, %v744_v9 }
 0x1a2   : > { %v2335_v11 = vpop.f32.mrb[14].mxu0  ;;  %2599 = vmatprep.subr.bf16.mxu1 %v2598_v10 }
 0x1a3   : > { %v754_v12 = vpop.f32.mrb[15].mxu0  ;;  %2601 = vmatpush3.bf16.msra.mxu1 %v2598_v10 }
 0x1a4   : > { %v2602_v13 = vpack.c.bf16 %v2335_v11, %v754_v12 }
 0x1a6   : > { %v2338_v14 = vpop.f32.mrb[16].mxu0  ;;  %2603 = vmatprep.subr.bf16.mxu1 %v2602_v13 }
 0x1a7   : > { %v764_v15 = vpop.f32.mrb[17].mxu0  ;;  %2605 = vmatpush3.bf16.msra.mxu1 %v2602_v13 }
 0x1a8   : > { %v2606_v17 = vpack.c.bf16 %v2338_v14, %v764_v15 }
 0x1aa   : > { %v2341_v19 = vpop.f32.mrb[18].mxu0  ;;  %2607 = vmatprep.subr.bf16.mxu1 %v2606_v17  ;;  %2393 = vmatmul.mubr.f32.vlgmr.msra.gmra.mrb[0].mxu1 %v3379_v16 }
 0x1ab   : > { %v774_v20 = vpop.f32.mrb[19].mxu0  ;;  %2609 = vmatpush3.bf16.msra.mxu1 %v2606_v17  ;;  %2395 = vmatprep.mubr.f32.mxu1 %v3382_v18 }
 0x1ac   : > { %v2610_v22 = vpack.c.bf16 %v2341_v19, %v774_v20  ;;  %v3448_v19 = vld [vmem:[%s3372_s29 + $0x8] sm:$0xff]  }
 0x1ae   : > { %v2344_v24 = vpop.f32.mrb[20].mxu0  ;;  %2611 = vmatprep.subr.bf16.mxu1 %v2610_v22  ;;  %2396 = vmatmul.mubr.f32.gmra.mrb[2].mxu1 %v3387_v21 }
 0x1af   : > { %v784_v25 = vpop.f32.mrb[21].mxu0  ;;  %2613 = vmatpush3.bf16.msra.mxu1 %v2610_v22  ;;  %2398 = vmatprep.mubr.f32.mxu1 %v3390_v23 }
 0x1b0   : > { %v2614_v27 = vpack.c.bf16 %v2344_v24, %v784_v25 }
 0x1b2   : > { %v2347_v29 = vpop.f32.mrb[22].mxu0  ;;  %2615 = vmatprep.subr.bf16.mxu1 %v2614_v27  ;;  %2399 = vmatmul.mubr.f32.gmra.mrb[4].mxu1 %v3395_v26 }
 0x1b3   : > { %v794_v30 = vpop.f32.mrb[23].mxu0  ;;  %2617 = vmatpush3.bf16.msra.mxu1 %v2614_v27  ;;  %2401 = vmatprep.mubr.f32.mxu1 %v3398_v28 }
 0x1b4   : > { %v2618_v32 = vpack.c.bf16 %v2347_v29, %v794_v30 }
 0x1b6   : > { %v2350_v34 = vpop.f32.mrb[24].mxu0  ;;  %2619 = vmatprep.subr.bf16.mxu1 %v2618_v32  ;;  %2402 = vmatmul.mubr.f32.gmra.mrb[6].mxu1 %v3403_v31 }
 0x1b7   : > { %v804_v35 = vpop.f32.mrb[25].mxu0  ;;  %2621 = vmatpush3.bf16.msra.mxu1 %v2618_v32  ;;  %2404 = vmatprep.mubr.f32.mxu1 %v3406_v33 }
 0x1b8   : > { %v2622_v37 = vpack.c.bf16 %v2350_v34, %v804_v35  ;;  %v2739_v34 = vld [vmem:[%s3372_s29 + $0x28] sm:$0xff]  }
 0x1ba   : > { %v2353_v39 = vpop.f32.mrb[26].mxu0  ;;  %2623 = vmatprep.subr.bf16.mxu1 %v2622_v37  ;;  %2405 = vmatmul.mubr.f32.gmra.mrb[8].mxu1 %v3411_v36 }
 0x1bb   : > { %v814_v40 = vpop.f32.mrb[27].mxu0  ;;  %2625 = vmatpush3.bf16.msra.mxu1 %v2622_v37  ;;  %2407 = vmatprep.mubr.f32.mxu1 %v3414_v38 }
 0x1bc   : > { %v2626_v42 = vpack.c.bf16 %v2353_v39, %v814_v40 }
 0x1be   : > { %v2356_v44 = vpop.f32.mrb[28].mxu0  ;;  %2627 = vmatprep.subr.bf16.mxu1 %v2626_v42  ;;  %2408 = vmatmul.mubr.f32.gmra.mrb[10].mxu1 %v3419_v41 }
 0x1bf   : > { %v824_v45 = vpop.f32.mrb[29].mxu0  ;;  %2629 = vmatpush3.bf16.msra.mxu1 %v2626_v42  ;;  %2410 = vmatprep.mubr.f32.mxu1 %v3422_v43  ;;  %v2741_v42 = vld [vmem:[%s3372_s29 + $0x38] sm:$0xff]  }
 0x1c0   : > { %v2630_v47 = vpack.c.bf16 %v2356_v44, %v824_v45 }
 0x1c2   : > { %v2359_v49 = vpop.f32.mrb[30].mxu0  ;;  %2631 = vmatprep.subr.bf16.mxu1 %v2630_v47  ;;  %2411 = vmatmul.mubr.f32.gmra.mrb[12].mxu1 %v3427_v46 }
 0x1c3   : > { %v834_v50 = vpop.f32.mrb[31].mxu0  ;;  %2633 = vmatpush3.bf16.msra.mxu1 %v2630_v47  ;;  %2413 = vmatprep.mubr.f32.mxu1 %v857_v48 }
 0x1c4   : > { %v2634_v54 = vpack.c.bf16 %v2359_v49, %v834_v50 }
 0x1c6   : > { %2635 = vmatprep.subr.bf16.mxu1 %v2634_v54  ;;  %v2476_v55 = vpop.f32.mrb[32].mxu0  ;;  %2414 = vmatmul.mubr.f32.gmra.mrb[14].mxu1 %v858_v51 }
 0x1c7   : > { %2637 = vmatpush3.bf16.msra.mxu1 %v2634_v54  ;;  %v1384_v56 = vpop.f32.mrb[33].mxu0  ;;  %2448 = vmatprep.mubr.f32.mxu1 %v3367_v52 }
 0x1c8   : > { %v2477_v57 = vpop.f32.mrb[34].mxu0 }
 0x1c9   : > { %v1528_v58 = vpack.c.bf16 %v2477_v57, %v2476_v55  ;;  %v1387_v59 = vpop.f32.mrb[35].mxu0 }
 0x1ca   : > { %v1527_v60 = vpack.c.bf16 %v1387_v59, %v1384_v56  ;;  %2449 = vmatmul.mubr.f32.vlgmr.msra.gmra.mrb[16].mxu1 %v3379_v16 }
 0x1cb   : > { %2451 = vmatprep.mubr.f32.mxu1 %v3382_v18 }
 0x1cc   : > { %2506 = vmatprep.subr.bf16.mxu1 %v1527_v60 }
 0x1cd   : > { %2507 = vmatpush3.bf16.msra.mxu1 %v1527_v60 }
 0x1ce   : > { %v2480_v61 = vpop.f32.mrb[36].mxu0  ;;  %2508 = vmatprep.subr.bf16.mxu1 %v1528_v58  ;;  %2452 = vmatmul.mubr.f32.gmra.mrb[18].mxu1 %v3387_v21  ;;  %v2736_v21 = vld [vmem:[%s3372_s29 + $0x10] sm:$0xff]  }
 0x1cf   : > { %v1400_v62 = vpop.f32.mrb[37].mxu0  ;;  %2454 = vmatprep.mubr.f32.mxu1 %v3390_v23 }
 0x1d0   : > { %v2481_v63 = vpop.f32.mrb[38].mxu0 }
 0x1d1   : > { %v1530_v0 = vpack.c.bf16 %v2481_v63, %v2480_v61  ;;  %v1403_v52 = vpop.f32.mrb[39].mxu0  ;;  %2509 = vmatpush3.bf16.msra.mxu1 %v1528_v58 }
 0x1d2   : > { %v1529_v1 = vpack.c.bf16 %v1403_v52, %v1400_v62  ;;  %2455 = vmatmul.mubr.f32.gmra.mrb[20].mxu1 %v3395_v26  ;;  %v2737_v26 = vld [vmem:[%s3372_s29 + $0x18] sm:$0xff]  }
 0x1d3   : > { %2457 = vmatprep.mubr.f32.mxu1 %v3398_v28  ;;  %v2738_v28 = vld [vmem:[%s3372_s29 + $0x20] sm:$0xff]  }
 0x1d4   : > { %2510 = vmatprep.subr.bf16.mxu1 %v1529_v1 }
 0x1d5   : > { %2511 = vmatpush3.bf16.msra.mxu1 %v1529_v1 }
 0x1d6   : > { %v2484_v2 = vpop.f32.mrb[40].mxu0  ;;  %2512 = vmatprep.subr.bf16.mxu1 %v1530_v0  ;;  %2458 = vmatmul.mubr.f32.gmra.mrb[22].mxu1 %v3403_v31 }
 0x1d7   : > { %v1416_v3 = vpop.f32.mrb[41].mxu0  ;;  %2460 = vmatprep.mubr.f32.mxu1 %v3406_v33 }
 0x1d8   : > { %v2485_v4 = vpop.f32.mrb[42].mxu0 }
 0x1d9   : > { %v1532_v5 = vpack.c.bf16 %v2485_v4, %v2484_v2  ;;  %v1419_v6 = vpop.f32.mrb[43].mxu0  ;;  %2513 = vmatpush3.bf16.msra.mxu1 %v1530_v0 }
 0x1da   : > { %v1531_v7 = vpack.c.bf16 %v1419_v6, %v1416_v3  ;;  %2461 = vmatmul.mubr.f32.gmra.mrb[24].mxu1 %v3411_v36  ;;  %v2740_v36 = vld [vmem:[%s3372_s29 + $0x30] sm:$0xff]  }
 0x1db   : > { %2463 = vmatprep.mubr.f32.mxu1 %v3414_v38 }
 0x1dc   : > { %2514 = vmatprep.subr.bf16.mxu1 %v1531_v7 }
 0x1dd   : > { %2515 = vmatpush3.bf16.msra.mxu1 %v1531_v7 }
 0x1de   : > { %v2488_v8 = vpop.f32.mrb[44].mxu0  ;;  %2516 = vmatprep.subr.bf16.mxu1 %v1532_v5  ;;  %2464 = vmatmul.mubr.f32.gmra.mrb[26].mxu1 %v3419_v41 }
 0x1df   : > { %v1432_v9 = vpop.f32.mrb[45].mxu0  ;;  %2466 = vmatprep.mubr.f32.mxu1 %v3422_v43 }
 0x1e0   : > { %v2489_v10 = vpop.f32.mrb[46].mxu0 }
 0x1e1   : > { %v1534_v11 = vpack.c.bf16 %v2489_v10, %v2488_v8  ;;  %v1435_v12 = vpop.f32.mrb[47].mxu0  ;;  %2517 = vmatpush3.bf16.msra.mxu1 %v1532_v5 }
 0x1e2   : > { %v1533_v13 = vpack.c.bf16 %v1435_v12, %v1432_v9  ;;  %2467 = vmatmul.mubr.f32.gmra.mrb[28].mxu1 %v3427_v46 }
 0x1e3   : > { %2469 = vmatprep.mubr.f32.mxu1 %v857_v48 }
 0x1e4   : > { %2518 = vmatprep.subr.bf16.mxu1 %v1533_v13 }
 0x1e5   : > { %2519 = vmatpush3.bf16.msra.mxu1 %v1533_v13 }
 0x1e6   : > { %v2492_v14 = vpop.f32.mrb[48].mxu0  ;;  %2520 = vmatprep.subr.bf16.mxu1 %v1534_v11  ;;  %2470 = vmatmul.mubr.f32.gmra.mrb[30].mxu1 %v858_v51 }
 0x1e7   : > { %v1448_v15 = vpop.f32.mrb[49].mxu0  ;;  %2522 = vmatprep.mubr.bf16.mxu1 %v3375_v53 }
 0x1e8   : > { %v2493_v16 = vpop.f32.mrb[50].mxu0 }
 0x1e9   : > { %v1697_v17 = vpack.c.bf16 %v2493_v16, %v2492_v14  ;;  %v1451_v18 = vpop.f32.mrb[51].mxu0  ;;  %2521 = vmatpush3.bf16.msra.mxu1 %v1534_v11 }
 0x1ea   : > { %v1696_v20 = vpack.c.bf16 %v1451_v18, %v1448_v15 }
 0x1ec   : > { %2538 = vmatprep.subr.bf16.mxu0 %v1696_v20  ;;  %2638 = vmatprep.subr.bf16.mxu1 %v1696_v20 }
 0x1ed   : > { %2523 = vmatmul.mubr.bf16.vlgmr.msra.gmra.mrb[32].mxu1 %v3448_v19  ;;  %2539 = vmatpush3.bf16.msra.mxu0 %v1696_v20 }
 0x1ee   : > { %2646 = vmatpush3.bf16.msra.mxu1 %v1696_v20  ;;  %v2496_v22 = vpop.f32.mrb[52].mxu0  ;;  %2540 = vmatprep.subr.bf16.mxu0 %v1697_v17 }
 0x1ef   : > { %2639 = vmatprep.subr.bf16.mxu1 %v1697_v17  ;;  %v1464_v53 = vpop.f32.mrb[53].mxu0  ;;  %2526 = vmatprep.mubr.bf16.mxu1 %v2736_v21 }
 0x1f0   : > { %v2497_v23 = vpop.f32.mrb[54].mxu0 }
 0x1f1   : > { %v1699_v24 = vpack.c.bf16 %v2497_v23, %v2496_v22  ;;  %v1467_v25 = vpop.f32.mrb[55].mxu0  ;;  %2541 = vmatpush3.bf16.msra.mxu0 %v1697_v17 }
 0x1f2   : > { %v1698_v27 = vpack.c.bf16 %v1467_v25, %v1464_v53  ;;  %2647 = vmatpush3.bf16.msra.mxu1 %v1697_v17 }
 0x1f4   : > { %2542 = vmatprep.subr.bf16.mxu0 %v1698_v27  ;;  %2640 = vmatprep.subr.bf16.mxu1 %v1698_v27 }
 0x1f5   : > { %2543 = vmatpush3.bf16.msra.mxu0 %v1698_v27  ;;  %2527 = vmatmul.mubr.bf16.gmra.mrb[36].mxu1 %v2737_v26 }
 0x1f6   : > { %2648 = vmatpush3.bf16.msra.mxu1 %v1698_v27  ;;  %2544 = vmatprep.subr.bf16.mxu0 %v1699_v24  ;;  %v2500_v29 = vpop.f32.mrb[56].mxu0 }
 0x1f7   : > { %2641 = vmatprep.subr.bf16.mxu1 %v1699_v24  ;;  %v1480_v30 = vpop.f32.mrb[57].mxu0  ;;  %2530 = vmatprep.mubr.bf16.mxu1 %v2738_v28 }
 0x1f8   : > { %v2501_v31 = vpop.f32.mrb[58].mxu0 }
 0x1f9   : > { %2545 = vmatpush3.bf16.msra.mxu0 %v1699_v24  ;;  %v1701_v32 = vpack.c.bf16 %v2501_v31, %v2500_v29  ;;  %v1483_v33 = vpop.f32.mrb[59].mxu0 }
 0x1fa   : > { %2649 = vmatpush3.bf16.msra.mxu1 %v1699_v24  ;;  %v1700_v35 = vpack.c.bf16 %v1483_v33, %v1480_v30 }
 0x1fc   : > { %2546 = vmatprep.subr.bf16.mxu0 %v1700_v35  ;;  %2642 = vmatprep.subr.bf16.mxu1 %v1700_v35 }
 0x1fd   : > { %2547 = vmatpush3.bf16.msra.mxu0 %v1700_v35  ;;  %2531 = vmatmul.mubr.bf16.gmra.mrb[40].mxu1 %v2739_v34 }
 0x1fe   : > { %2650 = vmatpush3.bf16.msra.mxu1 %v1700_v35  ;;  %v2504_v37 = vpop.f32.mrb[60].mxu0  ;;  %2548 = vmatprep.subr.bf16.mxu0 %v1701_v32 }
 0x1ff   : > { %v1496_v38 = vpop.f32.mrb[61].mxu0  ;;  %2643 = vmatprep.subr.bf16.mxu1 %v1701_v32  ;;  %2534 = vmatprep.mubr.bf16.mxu1 %v2740_v36 }
 0x200   : > { %v2505_v39 = vpop.f32.mrb[62].mxu0 }
 0x201   : > { %v1703_v40 = vpack.c.bf16 %v2505_v39, %v2504_v37  ;;  %v1499_v41 = vpop.f32.mrb[63].mxu0  ;;  %2549 = vmatpush3.bf16.msra.mxu0 %v1701_v32 }
 0x202   : > { %v1702_v43 = vpack.c.bf16 %v1499_v41, %v1496_v38  ;;  %2651 = vmatpush3.bf16.msra.mxu1 %v1701_v32 }
 0x204   : > { %2550 = vmatprep.subr.bf16.mxu0 %v1702_v43  ;;  %2644 = vmatprep.subr.bf16.mxu1 %v1702_v43 }
 0x205   : > { %2551 = vmatpush3.bf16.msra.mxu0 %v1702_v43  ;;  %2535 = vmatmul.mubr.bf16.gmra.mrb[44].mxu1 %v2741_v42 }
 0x206   : > { %2652 = vmatpush3.bf16.msra.mxu1 %v1702_v43  ;;  %2552 = vmatprep.subr.bf16.mxu0 %v1703_v40 }
 0x207   : > { %2645 = vmatprep.subr.bf16.mxu1 %v1703_v40  ;;  %2558 = vmatprep.mubr.bf16.mxu1 %v2736_v21 }
 0x209   : > { %2553 = vmatpush3.bf16.msra.mxu0 %v1703_v40 }
 0x20a   : > { %2653 = vmatpush3.bf16.msra.mxu1 %v1703_v40 }
 0x20c   : > { %2555 = vmatmul.mubr.bf16.vlgmr.msra.gmra.mrb[64].mxu0 %v3448_v19 }
 0x20d   : > { %2559 = vmatmul.mubr.bf16.vlgmr.msra.gmra.mrb[48].mxu1 %v2737_v26 }
 0x20e   : > { %2562 = vmatprep.mubr.bf16.mxu1 %v2738_v28 }
 0x215   : > { %2563 = vmatmul.mubr.bf16.gmra.mrb[52].mxu1 %v2739_v34 }
 0x216   : > { %2566 = vmatprep.mubr.bf16.mxu1 %v2740_v36 }
 0x21d   : > { %2567 = vmatmul.mubr.bf16.gmra.mrb[56].mxu1 %v2741_v42 }
 0x27d   : > { %v2394_v44 = vpop.f32.mrb[0].mxu1 }
 0x27e   : > { %1005 = vst.msk [vmem:[%s3464_s3 + $0x8] sm:$0xff] %vm521_vm0, %v2394_v44  ;;  %v925_v45 = vpop.f32.mrb[1].mxu1 }
 0x27f   : > { %1004 = vst.msk [vmem:[%s3464_s3] sm:$0xff] %vm521_vm0, %v925_v45 }
 0x281   : > { %v2397_v46 = vpop.f32.mrb[2].mxu1 }
 0x282   : > { %1007 = vst.msk [vmem:[%s3464_s3 + $0x18] sm:$0xff] %vm521_vm0, %v2397_v46  ;;  %v935_v47 = vpop.f32.mrb[3].mxu1 }
 0x283   : > { %1006 = vst.msk [vmem:[%s3464_s3 + $0x10] sm:$0xff] %vm521_vm0, %v935_v47 }
 0x285   : > { %v2400_v48 = vpop.f32.mrb[4].mxu1 }
 0x286   : > { %1009 = vst.msk [vmem:[%s3464_s3 + $0x28] sm:$0xff] %vm521_vm0, %v2400_v48  ;;  %v945_v49 = vpop.f32.mrb[5].mxu1 }
 0x287   : > { %1008 = vst.msk [vmem:[%s3464_s3 + $0x20] sm:$0xff] %vm521_vm0, %v945_v49 }
 0x289   : > { %v2403_v50 = vpop.f32.mrb[6].mxu1 }
 0x28a   : > { %1011 = vst.msk [vmem:[%s3464_s3 + $0x38] sm:$0xff] %vm521_vm0, %v2403_v50  ;;  %v955_v51 = vpop.f32.mrb[7].mxu1 }
 0x28b   : > { %1010 = vst.msk [vmem:[%s3464_s3 + $0x30] sm:$0xff] %vm521_vm0, %v955_v51 }
 0x28d   : > { %v2406_v54 = vpop.f32.mrb[8].mxu1 }
 0x28e   : > { %1013 = vst.msk [vmem:[%s3464_s3 + $0x48] sm:$0xff] %vm521_vm0, %v2406_v54  ;;  %v965_v55 = vpop.f32.mrb[9].mxu1 }
 0x28f   : > { %1012 = vst.msk [vmem:[%s3464_s3 + $0x40] sm:$0xff] %vm521_vm0, %v965_v55 }
 0x291   : > { %v2409_v56 = vpop.f32.mrb[10].mxu1 }
 0x292   : > { %1015 = vst.msk [vmem:[%s3464_s3 + $0x58] sm:$0xff] %vm521_vm0, %v2409_v56  ;;  %v975_v57 = vpop.f32.mrb[11].mxu1 }
 0x293   : > { %1014 = vst.msk [vmem:[%s3464_s3 + $0x50] sm:$0xff] %vm521_vm0, %v975_v57 }
 0x295   : > { %v2412_v58 = vpop.f32.mrb[12].mxu1 }
 0x296   : > { %1017 = vst.msk [vmem:[%s3464_s3 + $0x68] sm:$0xff] %vm521_vm0, %v2412_v58  ;;  %v985_v59 = vpop.f32.mrb[13].mxu1 }
 0x297   : > { %1016 = vst.msk [vmem:[%s3464_s3 + $0x60] sm:$0xff] %vm521_vm0, %v985_v59 }
 0x299   : > { %v2415_v60 = vpop.f32.mrb[14].mxu1 }
 0x29a   : > { %1019 = vst.msk [vmem:[%s3464_s3 + $0x78] sm:$0xff] %vm521_vm0, %v2415_v60  ;;  %v995_v61 = vpop.f32.mrb[15].mxu1 }
 0x29b   : > { %1018 = vst.msk [vmem:[%s3464_s3 + $0x70] sm:$0xff] %vm521_vm0, %v995_v61 }
 0x29d   : > { %v2450_v62 = vpop.f32.mrb[16].mxu1 }
 0x29e   : > { %2079 = vst.msk [vmem:[%s3464_s3 + $0x88] sm:$0xff] %vm521_vm0, %v2450_v62  ;;  %v1086_v63 = vpop.f32.mrb[17].mxu1 }
 0x29f   : > { %2078 = vst.msk [vmem:[%s3464_s3 + $0x80] sm:$0xff] %vm521_vm0, %v1086_v63 }
 0x2a1   : > { %v2453_v0 = vpop.f32.mrb[18].mxu1 }
 0x2a2   : > { %2081 = vst.msk [vmem:[%s3464_s3 + $0x98] sm:$0xff] %vm521_vm0, %v2453_v0  ;;  %v1096_v52 = vpop.f32.mrb[19].mxu1 }
 0x2a3   : > { %2080 = vst.msk [vmem:[%s3464_s3 + $0x90] sm:$0xff] %vm521_vm0, %v1096_v52 }
 0x2a5   : > { %v2456_v1 = vpop.f32.mrb[20].mxu1 }
 0x2a6   : > { %2083 = vst.msk [vmem:[%s3464_s3 + $0xa8] sm:$0xff] %vm521_vm0, %v2456_v1  ;;  %v1106_v2 = vpop.f32.mrb[21].mxu1 }
 0x2a7   : > { %2082 = vst.msk [vmem:[%s3464_s3 + $0xa0] sm:$0xff] %vm521_vm0, %v1106_v2 }
 0x2a9   : > { %v2459_v3 = vpop.f32.mrb[22].mxu1 }
 0x2aa   : > { %2085 = vst.msk [vmem:[%s3464_s3 + $0xb8] sm:$0xff] %vm521_vm0, %v2459_v3  ;;  %v1116_v4 = vpop.f32.mrb[23].mxu1 }
 0x2ab   : > { %2084 = vst.msk [vmem:[%s3464_s3 + $0xb0] sm:$0xff] %vm521_vm0, %v1116_v4 }
 0x2ad   : > { %v2462_v5 = vpop.f32.mrb[24].mxu1 }
 0x2ae   : > { %2087 = vst.msk [vmem:[%s3464_s3 + $0xc8] sm:$0xff] %vm521_vm0, %v2462_v5  ;;  %v1126_v6 = vpop.f32.mrb[25].mxu1 }
 0x2af   : > { %2086 = vst.msk [vmem:[%s3464_s3 + $0xc0] sm:$0xff] %vm521_vm0, %v1126_v6 }
 0x2b1   : > { %v2465_v7 = vpop.f32.mrb[26].mxu1 }
 0x2b2   : > { %2089 = vst.msk [vmem:[%s3464_s3 + $0xd8] sm:$0xff] %vm521_vm0, %v2465_v7  ;;  %v1136_v8 = vpop.f32.mrb[27].mxu1 }
 0x2b3   : > { %2088 = vst.msk [vmem:[%s3464_s3 + $0xd0] sm:$0xff] %vm521_vm0, %v1136_v8 }
 0x2b5   : > { %v2468_v9 = vpop.f32.mrb[28].mxu1 }
 0x2b6   : > { %2091 = vst.msk [vmem:[%s3464_s3 + $0xe8] sm:$0xff] %vm521_vm0, %v2468_v9  ;;  %v1146_v10 = vpop.f32.mrb[29].mxu1 }
 0x2b7   : > { %2090 = vst.msk [vmem:[%s3464_s3 + $0xe0] sm:$0xff] %vm521_vm0, %v1146_v10 }
 0x2b9   : > { %v2471_v11 = vpop.f32.mrb[30].mxu1 }
 0x2ba   : > { %2093 = vst.msk [vmem:[%s3464_s3 + $0xf8] sm:$0xff] %vm521_vm0, %v2471_v11  ;;  %v1156_v12 = vpop.f32.mrb[31].mxu1 }
 0x2bb   : > { %2092 = vst.msk [vmem:[%s3464_s3 + $0xf0] sm:$0xff] %vm521_vm0, %v1156_v12 }
 0x2c0   : > { %v2524_v13 = vpop.f32.mrb[32].mxu1 }
 0x2c1   : > { %1682 = vst.msk [vmem:[%s3535_s18 + $0x10] sm:$0xff] %vm521_vm0, %v2524_v13  ;;  %v1617_v14 = vpop.f32.mrb[33].mxu1 }
 0x2c2   : > { %1680 = vst.msk [vmem:[%s3535_s18] sm:$0xff] %vm521_vm0, %v1617_v14  ;;  %v2525_v15 = vpop.f32.mrb[34].mxu1 }
 0x2c3   : > { %1683 = vst.msk [vmem:[%s3535_s18 + $0x18] sm:$0xff] %vm521_vm0, %v2525_v15  ;;  %v1620_v16 = vpop.f32.mrb[35].mxu1 }
 0x2c4   : > { %1681 = vst.msk [vmem:[%s3535_s18 + $0x8] sm:$0xff] %vm521_vm0, %v1620_v16 }
 0x2c8   : > { %v2528_v17 = vpop.f32.mrb[36].mxu1 }
 0x2c9   : > { %1686 = vst.msk [vmem:[%s3535_s18 + $0x30] sm:$0xff] %vm521_vm0, %v2528_v17  ;;  %v1633_v18 = vpop.f32.mrb[37].mxu1 }
 0x2ca   : > { %1684 = vst.msk [vmem:[%s3535_s18 + $0x20] sm:$0xff] %vm521_vm0, %v1633_v18  ;;  %v2529_v19 = vpop.f32.mrb[38].mxu1 }
 0x2cb   : > { %1687 = vst.msk [vmem:[%s3535_s18 + $0x38] sm:$0xff] %vm521_vm0, %v2529_v19  ;;  %v1636_v20 = vpop.f32.mrb[39].mxu1 }
 0x2cc   : > { %1685 = vst.msk [vmem:[%s3535_s18 + $0x28] sm:$0xff] %vm521_vm0, %v1636_v20 }
 0x2d0   : > { %v2532_v21 = vpop.f32.mrb[40].mxu1 }
 0x2d1   : > { %1690 = vst.msk [vmem:[%s3535_s18 + $0x50] sm:$0xff] %vm521_vm0, %v2532_v21  ;;  %v1649_v22 = vpop.f32.mrb[41].mxu1 }
 0x2d2   : > { %1688 = vst.msk [vmem:[%s3535_s18 + $0x40] sm:$0xff] %vm521_vm0, %v1649_v22  ;;  %v2533_v53 = vpop.f32.mrb[42].mxu1 }
 0x2d3   : > { %1691 = vst.msk [vmem:[%s3535_s18 + $0x58] sm:$0xff] %vm521_vm0, %v2533_v53  ;;  %v1652_v23 = vpop.f32.mrb[43].mxu1 }
 0x2d4   : > { %1689 = vst.msk [vmem:[%s3535_s18 + $0x48] sm:$0xff] %vm521_vm0, %v1652_v23 }
 0x2d8   : > { %v2536_v24 = vpop.f32.mrb[44].mxu1 }
 0x2d9   : > { %1694 = vst.msk [vmem:[%s3535_s18 + $0x70] sm:$0xff] %vm521_vm0, %v2536_v24  ;;  %v1665_v25 = vpop.f32.mrb[45].mxu1 }
 0x2da   : > { %1692 = vst.msk [vmem:[%s3535_s18 + $0x60] sm:$0xff] %vm521_vm0, %v1665_v25  ;;  %v2537_v26 = vpop.f32.mrb[46].mxu1 }
 0x2db   : > { %1695 = vst.msk [vmem:[%s3535_s18 + $0x78] sm:$0xff] %vm521_vm0, %v2537_v26  ;;  %v1668_v27 = vpop.f32.mrb[47].mxu1 }
 0x2dc   : > { %1693 = vst.msk [vmem:[%s3535_s18 + $0x68] sm:$0xff] %vm521_vm0, %v1668_v27 }
 0x2df   : > { %v2556_v28 = vpop.f32.mrb[64].mxu0 }
 0x2e0   : > { %v2560_v29 = vpop.f32.mrb[48].mxu1  ;;  %2137 = vst.msk [vmem:[%s3535_s18 + $0x90] sm:$0xff] %vm521_vm0, %v2556_v28  ;;  %v1738_v30 = vpop.f32.mrb[65].mxu0 }
 0x2e1   : > { %2141 = vst.msk [vmem:[%s3535_s18 + $0xb0] sm:$0xff] %vm521_vm0, %v2560_v29  ;;  %v1754_v31 = vpop.f32.mrb[49].mxu1  ;;  %2135 = vst.msk [vmem:[%s3535_s18 + $0x80] sm:$0xff] %vm521_vm0, %v1738_v30  ;;  %v2557_v32 = vpop.f32.mrb[66].mxu0 }
 0x2e2   : > { %2139 = vst.msk [vmem:[%s3535_s18 + $0xa0] sm:$0xff] %vm521_vm0, %v1754_v31  ;;  %v2561_v33 = vpop.f32.mrb[50].mxu1  ;;  %2138 = vst.msk [vmem:[%s3535_s18 + $0x98] sm:$0xff] %vm521_vm0, %v2557_v32  ;;  %v1741_v34 = vpop.f32.mrb[67].mxu0 }
 0x2e3   : > { %2142 = vst.msk [vmem:[%s3535_s18 + $0xb8] sm:$0xff] %vm521_vm0, %v2561_v33  ;;  %v1757_v35 = vpop.f32.mrb[51].mxu1  ;;  %2136 = vst.msk [vmem:[%s3535_s18 + $0x88] sm:$0xff] %vm521_vm0, %v1741_v34 }
 0x2e4   : > { %2140 = vst.msk [vmem:[%s3535_s18 + $0xa8] sm:$0xff] %vm521_vm0, %v1757_v35 }
 0x2e8   : > { %v2564_v36 = vpop.f32.mrb[52].mxu1 }
 0x2e9   : > { %2145 = vst.msk [vmem:[%s3535_s18 + $0xd0] sm:$0xff] %vm521_vm0, %v2564_v36  ;;  %v1770_v37 = vpop.f32.mrb[53].mxu1 }
 0x2ea   : > { %2143 = vst.msk [vmem:[%s3535_s18 + $0xc0] sm:$0xff] %vm521_vm0, %v1770_v37  ;;  %v2565_v38 = vpop.f32.mrb[54].mxu1 }
 0x2eb   : > { %2146 = vst.msk [vmem:[%s3535_s18 + $0xd8] sm:$0xff] %vm521_vm0, %v2565_v38  ;;  %v1773_v39 = vpop.f32.mrb[55].mxu1 }
 0x2ec   : > { %2144 = vst.msk [vmem:[%s3535_s18 + $0xc8] sm:$0xff] %vm521_vm0, %v1773_v39 }
 0x2f0   : > { %v2568_v40 = vpop.f32.mrb[56].mxu1 }
 0x2f1   : > { %2149 = vst.msk [vmem:[%s3535_s18 + $0xf0] sm:$0xff] %vm521_vm0, %v2568_v40  ;;  %v1786_v41 = vpop.f32.mrb[57].mxu1 }
 0x2f2   : > { %2147 = vst.msk [vmem:[%s3535_s18 + $0xe0] sm:$0xff] %vm521_vm0, %v1786_v41  ;;  %v2569_v42 = vpop.f32.mrb[58].mxu1 }
 0x2f3   : > { %2150 = vst.msk [vmem:[%s3535_s18 + $0xf8] sm:$0xff] %vm521_vm0, %v2569_v42  ;;  %v1789_v43 = vpop.f32.mrb[59].mxu1 }
 0x2f4   : > { %2148 = vst.msk [vmem:[%s3535_s18 + $0xe8] sm:$0xff] %vm521_vm0, %v1789_v43 }
 0x2f5 PF: > { %s3647_s27 = sld [smem:[#allocation14_spill]]  ;;  %s3648_s28 = sld [smem:[#allocation13_spill]] }
 0x2f6   : > { %s3649_s26 = sld [smem:[#allocation15_spill]]  ;;  %s3650_s24 = smov %s2926_s25 }
 0x2fb   : > { %p24_p4 = scmp.ge.s32.totalorder %s3647_s27, 4   ;;  %s3651_s25 = smov %s3648_s28 }
 0x2fd   :  { %26 = sbr.rel (!%p24_p4) target bundleno = 11 (0xb), region = 149 }
 0x304   :  { %1855 = vsyncpa [#allocation3], 1 }
 0x305   :  { %1857 = vsyncpa [#allocation3 + $0x1], 1 }
 0x306   :  { %1858 = vsyncpa [#allocation5], 1 }
 0x307   :  { %1860 = vsyncpa [#allocation5 + $0x1], 1 }
 0x308   :  { %1861 = vsyncpa [#allocation8], 1 }
 0x309   :  { %1863 = vsyncpa [#allocation8 + $0x1], 1 }

</bundles_post_ra>
